<compile_context>
chip_gen: v7x
topology: tpu7x:2x2x1
jax: 0.10.0
libtpu: 0.0.40
codegen_flags: <defaults>
</compile_context>

<pallas_src>
import numpy as np

import jax
import jax.numpy as jnp
from jax import lax
from jax.experimental import pallas as pl
from jax.experimental.pallas import tpu as pltpu

_K = 3        # conv kernel size
_S = 4        # conv stride
_EPS = 1e-5   # BatchNorm2d eps
_SLOPE = 0.2  # LeakyReLU negative slope


# ----------------------------------------------------------------------------
# Host-side (trace-time) helpers
# ----------------------------------------------------------------------------
def _conv_out_hw(h, w, k=_K, s=_S):
    return (h - k) // s + 1, (w - k) // s + 1


def _im2col_first(x, k=_K, s=_S):
    """x: (N, C, H, W) -> lane-dense patches (C*k*k, N*OH*OW)."""
    N, C, H, W = x.shape
    OH, OW = _conv_out_hw(H, W, k, s)
    cols = []
    for kh in range(k):
        for kw in range(k):
            cols.append(x[:, :, kh:kh + s * OH:s, kw:kw + s * OW:s])  # (N,C,OH,OW)
    p = jnp.stack(cols, axis=2)            # (N, C, k*k, OH, OW), tap = kh*k+kw
    p = p.transpose(1, 2, 0, 3, 4)         # (C, k*k, N, OH, OW)
    return p.reshape(C * k * k, N * OH * OW), OH, OW


def _tap_map(ih, iw, oh, ow, k=_K, s=_S):
    """(1, k*k*oh*ow) int32; column t*oh*ow + p -> flat in-image input index."""
    m = np.empty((1, k * k * oh * ow), np.int32)
    for kh in range(k):
        for kw in range(k):
            t = kh * k + kw
            for r in range(oh):
                for c in range(ow):
                    m[0, t * oh * ow + r * ow + c] = (s * r + kh) * iw + (s * c + kw)
    return m


# ----------------------------------------------------------------------------
# Fused kernel builder (all sizes static, closed over)
# ----------------------------------------------------------------------------
def _make_kernel(N, C1, C2, C3, P1, P2, P3):
    taps = _K * _K
    f32 = jnp.float32

    def bn_lrelu(y, gamma, beta):
        # y: (C, N*P).  Training-mode BatchNorm2d: per-channel stats over all
        # N*OH*OW positions (lane reduction), biased variance, eps=1e-5.
        mean = jnp.mean(y, axis=-1, keepdims=True)
        yc = y - mean
        var = jnp.mean(yc * yc, axis=-1, keepdims=True)
        z = yc * (gamma * lax.rsqrt(var + _EPS)) + beta   # fold gamma once
        return jnp.where(z >= 0.0, z, _SLOPE * z)          # LeakyReLU(0.2)

    def gathered_conv(act, map_row, w_stacked_ref, patch_ref, c_in, p_in, p_out):
        # In-kernel "im2col by matmul".  The batch-independent 0/1 gather
        # matrix (p_in, 9*p_out) is regenerated from a tiny int32 index map
        # via an iota comparison -- no big HBM selection matrix, O(1) in N.
        rows = lax.broadcasted_iota(jnp.int32, (p_in, taps * p_out), 0)
        gmat = jnp.where(rows == map_row, 1.0, 0.0).astype(f32)
        for n in range(N):
            g = jnp.dot(act[:, n * p_in:(n + 1) * p_in], gmat,
                        preferred_element_type=f32)         # (c_in, 9*p_out)
            for t in range(taps):                            # restack tap-major
                patch_ref[t * c_in:(t + 1) * c_in,
                          n * p_out:(n + 1) * p_out] = g[:, t * p_out:(t + 1) * p_out]
        # One merged K = 9*c_in matmul replaces 9 per-tap matmuls + add chain.
        return jnp.dot(w_stacked_ref[...], patch_ref[...],
                       preferred_element_type=f32)           # (c_out, N*p_out)

    def kernel(p1_ref, w1_ref, w2_ref, w3_ref, bn_ref, m2_ref, m3_ref,
               out_ref, patch2_ref, patch3_ref):
        bn = bn_ref[...]                                     # (Cmax, 6)

        # Layer 1: conv as (C1, C0*9) @ (C0*9, N*P1) -> BN -> LReLU.
        y1 = jnp.dot(w1_ref[...], p1_ref[...], preferred_element_type=f32)
        a1 = bn_lrelu(y1, bn[0:C1, 0:1], bn[0:C1, 1:2])      # (C1, N*P1)

        # Layer 2: in-kernel gather + single K=9*C1 matmul.
        y2 = gathered_conv(a1, m2_ref[...], w2_ref, patch2_ref, C1, P1, P2)
        a2 = bn_lrelu(y2, bn[0:C2, 2:3], bn[0:C2, 3:4])      # (C2, N*P2)

        # Layer 3: same scheme, K=9*C2.
        y3 = gathered_conv(a2, m3_ref[...], w3_ref, patch3_ref, C2, P2, P3)
        a3 = bn_lrelu(y3, bn[0:C3, 4:5], bn[0:C3, 5:6])      # (C3, N*P3)

        out_ref[...] = a3

    return kernel


# ----------------------------------------------------------------------------
# Parameters / wrapper
# ----------------------------------------------------------------------------
def init_params(key):
    """Deterministic synthetic params matching the PyTorch module's shapes."""
    ks = jax.random.split(key, 6)

    def conv_init(kw, kb, c_out, c_in, ksz=_K):
        fan_in = c_in * ksz * ksz
        bound = 1.0 / jnp.sqrt(fan_in)
        w = jax.random.uniform(kw, (c_out, c_in, ksz, ksz), jnp.float32, -bound, bound)
        b = jax.random.uniform(kb, (c_out,), jnp.float32, -bound, bound)
        return w, b

    w1, b1 = conv_init(ks[0], ks[1], 8, 1)
    w2, b2 = conv_init(ks[2], ks[3], 16, 8)
    w3, b3 = conv_init(ks[4], ks[5], 1, 16)
    return {
        "disc1": {"w": w1, "b": b1, "gamma": jnp.ones((8,)), "beta": jnp.zeros((8,))},
        "disc2": {"w": w2, "b": b2, "gamma": jnp.ones((16,)), "beta": jnp.zeros((16,))},
        "disc3": {"w": w3, "b": b3, "gamma": jnp.ones((1,)), "beta": jnp.zeros((1,))},
    }


def _discriminator_fused(params, x):
    x = x.astype(jnp.float32)
    N, C0, H, W = x.shape
    k = _K

    # Layer-1 im2col (data independent, tiny) in XLA, lane-dense output.
    p1, OH1, OW1 = _im2col_first(x)
    OH2, OW2 = _conv_out_hw(OH1, OW1)
    OH3, OW3 = _conv_out_hw(OH2, OW2)
    assert OH3 >= 1 and OW3 >= 1, "input too small for three stride-4 k=3 convs"
    P1, P2, P3 = OH1 * OW1, OH2 * OW2, OH3 * OW3

    w1, w2, w3 = params["disc1"]["w"], params["disc2"]["w"], params["disc3"]["w"]
    c1, c2, c3 = w1.shape[0], w2.shape[0], w3.shape[0]

    # Layer-1 weights as (C1, C0*9); layers 2/3 stacked tap-major (C_out, 9*C_in)
    # so each whole conv is a single matmul.  Conv biases intentionally unused:
    # training-mode BatchNorm cancels per-channel constants exactly.
    w1m = w1.reshape(c1, C0 * k * k).astype(jnp.float32)
    w2s = w2.transpose(0, 2, 3, 1).reshape(c2, k * k * c1).astype(jnp.float32)
    w3s = w3.transpose(0, 2, 3, 1).reshape(c3, k * k * c2).astype(jnp.float32)

    # Pack all gamma/beta into one (Cmax, 6) operand: cols = g1,b1,g2,b2,g3,b3.
    cmax = max(c1, c2, c3)

    def col(v):
        v = v.astype(jnp.float32)
        return jnp.pad(v, (0, cmax - v.shape[0]))

    bn_pack = jnp.stack(
        [col(params["disc1"]["gamma"]), col(params["disc1"]["beta"]),
         col(params["disc2"]["gamma"]), col(params["disc2"]["beta"]),
         col(params["disc3"]["gamma"]), col(params["disc3"]["beta"])], axis=1)

    # Tiny batch-independent tap->position index maps (become jit constants).
    m2 = jnp.asarray(_tap_map(OH1, OW1, OH2, OW2))   # (1, 9*P2) int32
    m3 = jnp.asarray(_tap_map(OH2, OW2, OH3, OW3))   # (1, 9*P3) int32

    kernel = _make_kernel(N, c1, c2, c3, P1, P2, P3)
    vmem = pl.BlockSpec(memory_space=pltpu.MemorySpace.VMEM)
    out = pl.pallas_call(
        kernel,
        out_shape=jax.ShapeDtypeStruct((c3, N * P3), jnp.float32),
        in_specs=[vmem] * 7,
        out_specs=vmem,
        scratch_shapes=[pltpu.VMEM((k * k * c1, N * P2), jnp.float32),   # patch2
                        pltpu.VMEM((k * k * c2, N * P3), jnp.float32)],  # patch3
    )(p1, w1m, w2s, w3s, bn_pack, m2, m3)

    # (C3, N*OH3*OW3) -> (N, C3, OH3, OW3)  (NCHW like PyTorch)
    return out.reshape(c3, N, OH3, OW3).transpose(1, 0, 2, 3)


discriminator_forward = jax.jit(_discriminator_fused)


# ----------------------------------------------------------------------------
# Pure-JAX reference (includes the conv bias, which must cancel under BN)
# ----------------------------------------------------------------------------
def _reference(params, x):
    h = x.astype(jnp.float32)
    for name in ("disc1", "disc2", "disc3"):
        p = params[name]
        h = lax.conv_general_dilated(
            h, p["w"].astype(jnp.float32), window_strides=(_S, _S),
            padding="VALID", dimension_numbers=("NCHW", "OIHW", "NCHW"),
            precision=lax.Precision.HIGHEST)
        h = h + p["b"].reshape(1, -1, 1, 1)
        mean = jnp.mean(h, axis=(0, 2, 3), keepdims=True)
        var = jnp.mean((h - mean) ** 2, axis=(0, 2, 3), keepdims=True)
        h = (h - mean) * lax.rsqrt(var + _EPS)
        h = h * p["gamma"].reshape(1, -1, 1, 1) + p["beta"].reshape(1, -1, 1, 1)
        h = jnp.where(h >= 0.0, h, _SLOPE * h)
    return h


if __name__ == "__main__":
    key = jax.random.PRNGKey(0)
    k_param, k_x = jax.random.split(key)
    params = init_params(k_param)

    # NCHW single-channel input: 64x64 -> 16x16 -> 4x4 -> 1x1 through the three
    # (kernel=3, stride=4, padding=0) conv blocks.
    x = jax.random.normal(k_x, (2, 1, 64, 64), dtype=jnp.float32)

    out = discriminator_forward(params, x)
    jax.block_until_ready(out)
    assert out.shape == (2, 1, 1, 1), out.shape
    assert bool(jnp.all(jnp.isfinite(out)))

    ref = jax.jit(_reference)(params, x)
    np.testing.assert_allclose(np.asarray(out), np.asarray(ref), rtol=1e-2, atol=1e-3)

    print("KERNEL_OK")
</pallas_src>

<mosaic_0001>
module attributes {stable_mosaic.version = 11 : i64} {
  func.func @kernel(%arg0: memref<9x512xf32, #tpu.memory_space<vmem>>, %arg1: memref<8x9xf32, #tpu.memory_space<vmem>>, %arg2: memref<16x72xf32, #tpu.memory_space<vmem>>, %arg3: memref<1x144xf32, #tpu.memory_space<vmem>>, %arg4: memref<16x6xf32, #tpu.memory_space<vmem>>, %arg5: memref<1x144xi32, #tpu.memory_space<vmem>>, %arg6: memref<1x9xi32, #tpu.memory_space<vmem>>, %arg7: memref<1x2xf32, #tpu.memory_space<vmem>>, %arg8: memref<72x32xf32, #tpu.memory_space<vmem>>, %arg9: memref<144x2xf32, #tpu.memory_space<vmem>>) attributes {dimension_semantics = [], scalar_prefetch = 0 : i64, scratch_operands = 2 : i64, tpu.core_type = #tpu.core_type<tc>} {
    %c0 = arith.constant 0 : index
    %c0_0 = arith.constant 0 : index
    %0 = vector.load %arg4[%c0, %c0_0] : memref<16x6xf32, #tpu.memory_space<vmem>>, vector<16x6xf32>
    %c0_1 = arith.constant 0 : index
    %c0_2 = arith.constant 0 : index
    %1 = vector.load %arg1[%c0_1, %c0_2] : memref<8x9xf32, #tpu.memory_space<vmem>>, vector<8x9xf32>
    %c0_3 = arith.constant 0 : index
    %c0_4 = arith.constant 0 : index
    %2 = vector.load %arg0[%c0_3, %c0_4] : memref<9x512xf32, #tpu.memory_space<vmem>>, vector<9x512xf32>
    %cst = arith.constant dense<0.000000e+00> : vector<8x512xf32>
    %3 = tpu.matmul %1, %2, %cst {dimension_numbers = #tpu.dot_dimension_numbers<[1], [0], [0], [1], [0, 0, 1, 1], [], []>} : vector<8x9xf32>, vector<9x512xf32>, vector<8x512xf32> -> vector<8x512xf32>
    %4 = vector.extract_strided_slice %0 {offsets = [0, 0], sizes = [8, 1], strides = [1, 1]} : vector<16x6xf32> to vector<8x1xf32>
    %5 = vector.extract_strided_slice %0 {offsets = [0, 1], sizes = [8, 1], strides = [1, 1]} : vector<16x6xf32> to vector<8x1xf32>
    %cst_5 = arith.constant dense<0.000000e+00> : vector<8xf32>
    %6 = vector.multi_reduction <add>, %3, %cst_5 [1] : vector<8x512xf32> to vector<8xf32>
    %7 = vector.shape_cast %6 : vector<8xf32> to vector<8x1xf32>
    %cst_6 = arith.constant 5.120000e+02 : f32
    %8 = vector.broadcast %cst_6 : f32 to vector<8x1xf32>
    %9 = arith.divf %7, %8 : vector<8x1xf32>
    %10 = vector.broadcast %9 : vector<8x1xf32> to vector<8x512xf32>
    %11 = arith.subf %3, %10 : vector<8x512xf32>
    %12 = arith.mulf %11, %11 : vector<8x512xf32>
    %cst_7 = arith.constant dense<0.000000e+00> : vector<8xf32>
    %13 = vector.multi_reduction <add>, %12, %cst_7 [1] : vector<8x512xf32> to vector<8xf32>
    %14 = vector.shape_cast %13 : vector<8xf32> to vector<8x1xf32>
    %cst_8 = arith.constant 5.120000e+02 : f32
    %15 = vector.broadcast %cst_8 : f32 to vector<8x1xf32>
    %16 = arith.divf %14, %15 : vector<8x1xf32>
    %cst_9 = arith.constant 9.99999974E-6 : f32
    %17 = vector.broadcast %cst_9 : f32 to vector<8x1xf32>
    %18 = arith.addf %16, %17 : vector<8x1xf32>
    %19 = math.rsqrt %18 : vector<8x1xf32>
    %20 = arith.mulf %4, %19 : vector<8x1xf32>
    %21 = vector.broadcast %20 : vector<8x1xf32> to vector<8x512xf32>
    %22 = arith.mulf %11, %21 : vector<8x512xf32>
    %23 = vector.broadcast %5 : vector<8x1xf32> to vector<8x512xf32>
    %24 = arith.addf %22, %23 : vector<8x512xf32>
    %cst_10 = arith.constant 0.000000e+00 : f32
    %25 = vector.broadcast %cst_10 : f32 to vector<8x512xf32>
    %26 = arith.cmpf oge, %24, %25 : vector<8x512xf32>
    %cst_11 = arith.constant 2.000000e-01 : f32
    %27 = vector.broadcast %cst_11 : f32 to vector<8x512xf32>
    %28 = arith.mulf %27, %24 : vector<8x512xf32>
    %29 = arith.select %26, %24, %28 : vector<8x512xi1>, vector<8x512xf32>
    %c0_12 = arith.constant 0 : index
    %c0_13 = arith.constant 0 : index
    %30 = vector.load %arg5[%c0_12, %c0_13] : memref<1x144xi32, #tpu.memory_space<vmem>>, vector<1x144xi32>
    %31 = tpu.iota {dimensions = array<i32: 0>} : vector<256x144xi32>
    %32 = vector.broadcast %30 : vector<1x144xi32> to vector<256x144xi32>
    %33 = arith.cmpi eq, %31, %32 : vector<256x144xi32>
    %cst_14 = arith.constant 1.000000e+00 : f32
    %cst_15 = arith.constant 0.000000e+00 : f32
    %34 = vector.broadcast %cst_14 : f32 to vector<256x144xf32>
    %35 = vector.broadcast %cst_15 : f32 to vector<256x144xf32>
    %36 = arith.select %33, %34, %35 : vector<256x144xi1>, vector<256x144xf32>
    %37 = vector.extract_strided_slice %29 {offsets = [0, 0], sizes = [8, 256], strides = [1, 1]} : vector<8x512xf32> to vector<8x256xf32>
    %cst_16 = arith.constant dense<0.000000e+00> : vector<8x144xf32>
    %38 = tpu.matmul %37, %36, %cst_16 {dimension_numbers = #tpu.dot_dimension_numbers<[1], [0], [0], [1], [0, 0, 1, 1], [], []>} : vector<8x256xf32>, vector<256x144xf32>, vector<8x144xf32> -> vector<8x144xf32>
    %39 = vector.extract_strided_slice %38 {offsets = [0, 0], sizes = [8, 16], strides = [1, 1]} : vector<8x144xf32> to vector<8x16xf32>
    %c0_17 = arith.constant 0 : index
    %c0_18 = arith.constant 0 : index
    %40 = vector.load %arg8[%c0_17, %c0_18] : memref<72x32xf32, #tpu.memory_space<vmem>>, vector<8x16xf32>
    tpu.vector_store %arg8[%c0_17, %c0_18], %39 {strides = array<i32>} : memref<72x32xf32, #tpu.memory_space<vmem>>, vector<8x16xf32>,
    %41 = vector.extract_strided_slice %38 {offsets = [0, 16], sizes = [8, 16], strides = [1, 1]} : vector<8x144xf32> to vector<8x16xf32>
    %c8 = arith.constant 8 : index
    %c0_19 = arith.constant 0 : index
    %42 = vector.load %arg8[%c8, %c0_19] : memref<72x32xf32, #tpu.memory_space<vmem>>, vector<8x16xf32>
    tpu.vector_store %arg8[%c8, %c0_19], %41 {strides = array<i32>} : memref<72x32xf32, #tpu.memory_space<vmem>>, vector<8x16xf32>,
    %43 = vector.extract_strided_slice %38 {offsets = [0, 32], sizes = [8, 16], strides = [1, 1]} : vector<8x144xf32> to vector<8x16xf32>
    %c16 = arith.constant 16 : index
    %c0_20 = arith.constant 0 : index
    %44 = vector.load %arg8[%c16, %c0_20] : memref<72x32xf32, #tpu.memory_space<vmem>>, vector<8x16xf32>
    tpu.vector_store %arg8[%c16, %c0_20], %43 {strides = array<i32>} : memref<72x32xf32, #tpu.memory_space<vmem>>, vector<8x16xf32>,
    %45 = vector.extract_strided_slice %38 {offsets = [0, 48], sizes = [8, 16], strides = [1, 1]} : vector<8x144xf32> to vector<8x16xf32>
    %c24 = arith.constant 24 : index
    %c0_21 = arith.constant 0 : index
    %46 = vector.load %arg8[%c24, %c0_21] : memref<72x32xf32, #tpu.memory_space<vmem>>, vector<8x16xf32>
    tpu.vector_store %arg8[%c24, %c0_21], %45 {strides = array<i32>} : memref<72x32xf32, #tpu.memory_space<vmem>>, vector<8x16xf32>,
    %47 = vector.extract_strided_slice %38 {offsets = [0, 64], sizes = [8, 16], strides = [1, 1]} : vector<8x144xf32> to vector<8x16xf32>
    %c32 = arith.constant 32 : index
    %c0_22 = arith.constant 0 : index
    %48 = vector.load %arg8[%c32, %c0_22] : memref<72x32xf32, #tpu.memory_space<vmem>>, vector<8x16xf32>
    tpu.vector_store %arg8[%c32, %c0_22], %47 {strides = array<i32>} : memref<72x32xf32, #tpu.memory_space<vmem>>, vector<8x16xf32>,
    %49 = vector.extract_strided_slice %38 {offsets = [0, 80], sizes = [8, 16], strides = [1, 1]} : vector<8x144xf32> to vector<8x16xf32>
    %c40 = arith.constant 40 : index
    %c0_23 = arith.constant 0 : index
    %50 = vector.load %arg8[%c40, %c0_23] : memref<72x32xf32, #tpu.memory_space<vmem>>, vector<8x16xf32>
    tpu.vector_store %arg8[%c40, %c0_23], %49 {strides = array<i32>} : memref<72x32xf32, #tpu.memory_space<vmem>>, vector<8x16xf32>,
    %51 = vector.extract_strided_slice %38 {offsets = [0, 96], sizes = [8, 16], strides = [1, 1]} : vector<8x144xf32> to vector<8x16xf32>
    %c48 = arith.constant 48 : index
    %c0_24 = arith.constant 0 : index
    %52 = vector.load %arg8[%c48, %c0_24] : memref<72x32xf32, #tpu.memory_space<vmem>>, vector<8x16xf32>
    tpu.vector_store %arg8[%c48, %c0_24], %51 {strides = array<i32>} : memref<72x32xf32, #tpu.memory_space<vmem>>, vector<8x16xf32>,
    %53 = vector.extract_strided_slice %38 {offsets = [0, 112], sizes = [8, 16], strides = [1, 1]} : vector<8x144xf32> to vector<8x16xf32>
    %c56 = arith.constant 56 : index
    %c0_25 = arith.constant 0 : index
    %54 = vector.load %arg8[%c56, %c0_25] : memref<72x32xf32, #tpu.memory_space<vmem>>, vector<8x16xf32>
    tpu.vector_store %arg8[%c56, %c0_25], %53 {strides = array<i32>} : memref<72x32xf32, #tpu.memory_space<vmem>>, vector<8x16xf32>,
    %55 = vector.extract_strided_slice %38 {offsets = [0, 128], sizes = [8, 16], strides = [1, 1]} : vector<8x144xf32> to vector<8x16xf32>
    %c64 = arith.constant 64 : index
    %c0_26 = arith.constant 0 : index
    %56 = vector.load %arg8[%c64, %c0_26] : memref<72x32xf32, #tpu.memory_space<vmem>>, vector<8x16xf32>
    tpu.vector_store %arg8[%c64, %c0_26], %55 {strides = array<i32>} : memref<72x32xf32, #tpu.memory_space<vmem>>, vector<8x16xf32>,
    %57 = vector.extract_strided_slice %29 {offsets = [0, 256], sizes = [8, 256], strides = [1, 1]} : vector<8x512xf32> to vector<8x256xf32>
    %cst_27 = arith.constant dense<0.000000e+00> : vector<8x144xf32>
    %58 = tpu.matmul %57, %36, %cst_27 {dimension_numbers = #tpu.dot_dimension_numbers<[1], [0], [0], [1], [0, 0, 1, 1], [], []>} : vector<8x256xf32>, vector<256x144xf32>, vector<8x144xf32> -> vector<8x144xf32>
    %59 = vector.extract_strided_slice %58 {offsets = [0, 0], sizes = [8, 16], strides = [1, 1]} : vector<8x144xf32> to vector<8x16xf32>
    %c0_28 = arith.constant 0 : index
    %c16_29 = arith.constant 16 : index
    %60 = vector.load %arg8[%c0_28, %c16_29] : memref<72x32xf32, #tpu.memory_space<vmem>>, vector<8x16xf32>
    tpu.vector_store %arg8[%c0_28, %c16_29], %59 {strides = array<i32>} : memref<72x32xf32, #tpu.memory_space<vmem>>, vector<8x16xf32>,
    %61 = vector.extract_strided_slice %58 {offsets = [0, 16], sizes = [8, 16], strides = [1, 1]} : vector<8x144xf32> to vector<8x16xf32>
    %c8_30 = arith.constant 8 : index
    %c16_31 = arith.constant 16 : index
    %62 = vector.load %arg8[%c8_30, %c16_31] : memref<72x32xf32, #tpu.memory_space<vmem>>, vector<8x16xf32>
    tpu.vector_store %arg8[%c8_30, %c16_31], %61 {strides = array<i32>} : memref<72x32xf32, #tpu.memory_space<vmem>>, vector<8x16xf32>,
    %63 = vector.extract_strided_slice %58 {offsets = [0, 32], sizes = [8, 16], strides = [1, 1]} : vector<8x144xf32> to vector<8x16xf32>
    %c16_32 = arith.constant 16 : index
    %c16_33 = arith.constant 16 : index
    %64 = vector.load %arg8[%c16_32, %c16_33] : memref<72x32xf32, #tpu.memory_space<vmem>>, vector<8x16xf32>
    tpu.vector_store %arg8[%c16_32, %c16_33], %63 {strides = array<i32>} : memref<72x32xf32, #tpu.memory_space<vmem>>, vector<8x16xf32>,
    %65 = vector.extract_strided_slice %58 {offsets = [0, 48], sizes = [8, 16], strides = [1, 1]} : vector<8x144xf32> to vector<8x16xf32>
    %c24_34 = arith.constant 24 : index
    %c16_35 = arith.constant 16 : index
    %66 = vector.load %arg8[%c24_34, %c16_35] : memref<72x32xf32, #tpu.memory_space<vmem>>, vector<8x16xf32>
    tpu.vector_store %arg8[%c24_34, %c16_35], %65 {strides = array<i32>} : memref<72x32xf32, #tpu.memory_space<vmem>>, vector<8x16xf32>,
    %67 = vector.extract_strided_slice %58 {offsets = [0, 64], sizes = [8, 16], strides = [1, 1]} : vector<8x144xf32> to vector<8x16xf32>
    %c32_36 = arith.constant 32 : index
    %c16_37 = arith.constant 16 : index
    %68 = vector.load %arg8[%c32_36, %c16_37] : memref<72x32xf32, #tpu.memory_space<vmem>>, vector<8x16xf32>
    tpu.vector_store %arg8[%c32_36, %c16_37], %67 {strides = array<i32>} : memref<72x32xf32, #tpu.memory_space<vmem>>, vector<8x16xf32>,
    %69 = vector.extract_strided_slice %58 {offsets = [0, 80], sizes = [8, 16], strides = [1, 1]} : vector<8x144xf32> to vector<8x16xf32>
    %c40_38 = arith.constant 40 : index
    %c16_39 = arith.constant 16 : index
    %70 = vector.load %arg8[%c40_38, %c16_39] : memref<72x32xf32, #tpu.memory_space<vmem>>, vector<8x16xf32>
    tpu.vector_store %arg8[%c40_38, %c16_39], %69 {strides = array<i32>} : memref<72x32xf32, #tpu.memory_space<vmem>>, vector<8x16xf32>,
    %71 = vector.extract_strided_slice %58 {offsets = [0, 96], sizes = [8, 16], strides = [1, 1]} : vector<8x144xf32> to vector<8x16xf32>
    %c48_40 = arith.constant 48 : index
    %c16_41 = arith.constant 16 : index
    %72 = vector.load %arg8[%c48_40, %c16_41] : memref<72x32xf32, #tpu.memory_space<vmem>>, vector<8x16xf32>
    tpu.vector_store %arg8[%c48_40, %c16_41], %71 {strides = array<i32>} : memref<72x32xf32, #tpu.memory_space<vmem>>, vector<8x16xf32>,
    %73 = vector.extract_strided_slice %58 {offsets = [0, 112], sizes = [8, 16], strides = [1, 1]} : vector<8x144xf32> to vector<8x16xf32>
    %c56_42 = arith.constant 56 : index
    %c16_43 = arith.constant 16 : index
    %74 = vector.load %arg8[%c56_42, %c16_43] : memref<72x32xf32, #tpu.memory_space<vmem>>, vector<8x16xf32>
    tpu.vector_store %arg8[%c56_42, %c16_43], %73 {strides = array<i32>} : memref<72x32xf32, #tpu.memory_space<vmem>>, vector<8x16xf32>,
    %75 = vector.extract_strided_slice %58 {offsets = [0, 128], sizes = [8, 16], strides = [1, 1]} : vector<8x144xf32> to vector<8x16xf32>
    %c64_44 = arith.constant 64 : index
    %c16_45 = arith.constant 16 : index
    %76 = vector.load %arg8[%c64_44, %c16_45] : memref<72x32xf32, #tpu.memory_space<vmem>>, vector<8x16xf32>
    tpu.vector_store %arg8[%c64_44, %c16_45], %75 {strides = array<i32>} : memref<72x32xf32, #tpu.memory_space<vmem>>, vector<8x16xf32>,
    %c0_46 = arith.constant 0 : index
    %c0_47 = arith.constant 0 : index
    %77 = vector.load %arg2[%c0_46, %c0_47] : memref<16x72xf32, #tpu.memory_space<vmem>>, vector<16x72xf32>
    %c0_48 = arith.constant 0 : index
    %c0_49 = arith.constant 0 : index
    %78 = vector.load %arg8[%c0_48, %c0_49] : memref<72x32xf32, #tpu.memory_space<vmem>>, vector<72x32xf32>
    %cst_50 = arith.constant dense<0.000000e+00> : vector<16x32xf32>
    %79 = tpu.matmul %77, %78, %cst_50 {dimension_numbers = #tpu.dot_dimension_numbers<[1], [0], [0], [1], [0, 0, 1, 1], [], []>} : vector<16x72xf32>, vector<72x32xf32>, vector<16x32xf32> -> vector<16x32xf32>
    %80 = vector.extract_strided_slice %0 {offsets = [0, 2], sizes = [16, 1], strides = [1, 1]} : vector<16x6xf32> to vector<16x1xf32>
    %81 = vector.extract_strided_slice %0 {offsets = [0, 3], sizes = [16, 1], strides = [1, 1]} : vector<16x6xf32> to vector<16x1xf32>
    %cst_51 = arith.constant dense<0.000000e+00> : vector<16xf32>
    %82 = vector.multi_reduction <add>, %79, %cst_51 [1] : vector<16x32xf32> to vector<16xf32>
    %83 = vector.shape_cast %82 : vector<16xf32> to vector<16x1xf32>
    %cst_52 = arith.constant 3.200000e+01 : f32
    %84 = vector.broadcast %cst_52 : f32 to vector<16x1xf32>
    %85 = arith.divf %83, %84 : vector<16x1xf32>
    %86 = vector.broadcast %85 : vector<16x1xf32> to vector<16x32xf32>
    %87 = arith.subf %79, %86 : vector<16x32xf32>
    %88 = arith.mulf %87, %87 : vector<16x32xf32>
    %cst_53 = arith.constant dense<0.000000e+00> : vector<16xf32>
    %89 = vector.multi_reduction <add>, %88, %cst_53 [1] : vector<16x32xf32> to vector<16xf32>
    %90 = vector.shape_cast %89 : vector<16xf32> to vector<16x1xf32>
    %cst_54 = arith.constant 3.200000e+01 : f32
    %91 = vector.broadcast %cst_54 : f32 to vector<16x1xf32>
    %92 = arith.divf %90, %91 : vector<16x1xf32>
    %cst_55 = arith.constant 9.99999974E-6 : f32
    %93 = vector.broadcast %cst_55 : f32 to vector<16x1xf32>
    %94 = arith.addf %92, %93 : vector<16x1xf32>
    %95 = math.rsqrt %94 : vector<16x1xf32>
    %96 = arith.mulf %80, %95 : vector<16x1xf32>
    %97 = vector.broadcast %96 : vector<16x1xf32> to vector<16x32xf32>
    %98 = arith.mulf %87, %97 : vector<16x32xf32>
    %99 = vector.broadcast %81 : vector<16x1xf32> to vector<16x32xf32>
    %100 = arith.addf %98, %99 : vector<16x32xf32>
    %cst_56 = arith.constant 0.000000e+00 : f32
    %101 = vector.broadcast %cst_56 : f32 to vector<16x32xf32>
    %102 = arith.cmpf oge, %100, %101 : vector<16x32xf32>
    %cst_57 = arith.constant 2.000000e-01 : f32
    %103 = vector.broadcast %cst_57 : f32 to vector<16x32xf32>
    %104 = arith.mulf %103, %100 : vector<16x32xf32>
    %105 = arith.select %102, %100, %104 : vector<16x32xi1>, vector<16x32xf32>
    %c0_58 = arith.constant 0 : index
    %c0_59 = arith.constant 0 : index
    %106 = vector.load %arg6[%c0_58, %c0_59] : memref<1x9xi32, #tpu.memory_space<vmem>>, vector<1x9xi32>
    %107 = tpu.iota {dimensions = array<i32: 0>} : vector<16x9xi32>
    %108 = vector.broadcast %106 : vector<1x9xi32> to vector<16x9xi32>
    %109 = arith.cmpi eq, %107, %108 : vector<16x9xi32>
    %cst_60 = arith.constant 1.000000e+00 : f32
    %cst_61 = arith.constant 0.000000e+00 : f32
    %110 = vector.broadcast %cst_60 : f32 to vector<16x9xf32>
    %111 = vector.broadcast %cst_61 : f32 to vector<16x9xf32>
    %112 = arith.select %109, %110, %111 : vector<16x9xi1>, vector<16x9xf32>
    %113 = vector.extract_strided_slice %105 {offsets = [0, 0], sizes = [16, 16], strides = [1, 1]} : vector<16x32xf32> to vector<16x16xf32>
    %cst_62 = arith.constant dense<0.000000e+00> : vector<16x9xf32>
    %114 = tpu.matmul %113, %112, %cst_62 {dimension_numbers = #tpu.dot_dimension_numbers<[1], [0], [0], [1], [0, 0, 1, 1], [], []>} : vector<16x16xf32>, vector<16x9xf32>, vector<16x9xf32> -> vector<16x9xf32>
    %115 = vector.extract_strided_slice %114 {offsets = [0, 0], sizes = [16, 1], strides = [1, 1]} : vector<16x9xf32> to vector<16x1xf32>
    %c0_63 = arith.constant 0 : index
    %c0_64 = arith.constant 0 : index
    %116 = vector.load %arg9[%c0_63, %c0_64] : memref<144x2xf32, #tpu.memory_space<vmem>>, vector<16x1xf32>
    tpu.vector_store %arg9[%c0_63, %c0_64], %115 {strides = array<i32>} : memref<144x2xf32, #tpu.memory_space<vmem>>, vector<16x1xf32>,
    %117 = vector.extract_strided_slice %114 {offsets = [0, 1], sizes = [16, 1], strides = [1, 1]} : vector<16x9xf32> to vector<16x1xf32>
    %c16_65 = arith.constant 16 : index
    %c0_66 = arith.constant 0 : index
    %118 = vector.load %arg9[%c16_65, %c0_66] : memref<144x2xf32, #tpu.memory_space<vmem>>, vector<16x1xf32>
    tpu.vector_store %arg9[%c16_65, %c0_66], %117 {strides = array<i32>} : memref<144x2xf32, #tpu.memory_space<vmem>>, vector<16x1xf32>,
    %119 = vector.extract_strided_slice %114 {offsets = [0, 2], sizes = [16, 1], strides = [1, 1]} : vector<16x9xf32> to vector<16x1xf32>
    %c32_67 = arith.constant 32 : index
    %c0_68 = arith.constant 0 : index
    %120 = vector.load %arg9[%c32_67, %c0_68] : memref<144x2xf32, #tpu.memory_space<vmem>>, vector<16x1xf32>
    tpu.vector_store %arg9[%c32_67, %c0_68], %119 {strides = array<i32>} : memref<144x2xf32, #tpu.memory_space<vmem>>, vector<16x1xf32>,
    %121 = vector.extract_strided_slice %114 {offsets = [0, 3], sizes = [16, 1], strides = [1, 1]} : vector<16x9xf32> to vector<16x1xf32>
    %c48_69 = arith.constant 48 : index
    %c0_70 = arith.constant 0 : index
    %122 = vector.load %arg9[%c48_69, %c0_70] : memref<144x2xf32, #tpu.memory_space<vmem>>, vector<16x1xf32>
    tpu.vector_store %arg9[%c48_69, %c0_70], %121 {strides = array<i32>} : memref<144x2xf32, #tpu.memory_space<vmem>>, vector<16x1xf32>,
    %123 = vector.extract_strided_slice %114 {offsets = [0, 4], sizes = [16, 1], strides = [1, 1]} : vector<16x9xf32> to vector<16x1xf32>
    %c64_71 = arith.constant 64 : index
    %c0_72 = arith.constant 0 : index
    %124 = vector.load %arg9[%c64_71, %c0_72] : memref<144x2xf32, #tpu.memory_space<vmem>>, vector<16x1xf32>
    tpu.vector_store %arg9[%c64_71, %c0_72], %123 {strides = array<i32>} : memref<144x2xf32, #tpu.memory_space<vmem>>, vector<16x1xf32>,
    %125 = vector.extract_strided_slice %114 {offsets = [0, 5], sizes = [16, 1], strides = [1, 1]} : vector<16x9xf32> to vector<16x1xf32>
    %c80 = arith.constant 80 : index
    %c0_73 = arith.constant 0 : index
    %126 = vector.load %arg9[%c80, %c0_73] : memref<144x2xf32, #tpu.memory_space<vmem>>, vector<16x1xf32>
    tpu.vector_store %arg9[%c80, %c0_73], %125 {strides = array<i32>} : memref<144x2xf32, #tpu.memory_space<vmem>>, vector<16x1xf32>,
    %127 = vector.extract_strided_slice %114 {offsets = [0, 6], sizes = [16, 1], strides = [1, 1]} : vector<16x9xf32> to vector<16x1xf32>
    %c96 = arith.constant 96 : index
    %c0_74 = arith.constant 0 : index
    %128 = vector.load %arg9[%c96, %c0_74] : memref<144x2xf32, #tpu.memory_space<vmem>>, vector<16x1xf32>
    tpu.vector_store %arg9[%c96, %c0_74], %127 {strides = array<i32>} : memref<144x2xf32, #tpu.memory_space<vmem>>, vector<16x1xf32>,
    %129 = vector.extract_strided_slice %114 {offsets = [0, 7], sizes = [16, 1], strides = [1, 1]} : vector<16x9xf32> to vector<16x1xf32>
    %c112 = arith.constant 112 : index
    %c0_75 = arith.constant 0 : index
    %130 = vector.load %arg9[%c112, %c0_75] : memref<144x2xf32, #tpu.memory_space<vmem>>, vector<16x1xf32>
    tpu.vector_store %arg9[%c112, %c0_75], %129 {strides = array<i32>} : memref<144x2xf32, #tpu.memory_space<vmem>>, vector<16x1xf32>,
    %131 = vector.extract_strided_slice %114 {offsets = [0, 8], sizes = [16, 1], strides = [1, 1]} : vector<16x9xf32> to vector<16x1xf32>
    %c128 = arith.constant 128 : index
    %c0_76 = arith.constant 0 : index
    %132 = vector.load %arg9[%c128, %c0_76] : memref<144x2xf32, #tpu.memory_space<vmem>>, vector<16x1xf32>
    tpu.vector_store %arg9[%c128, %c0_76], %131 {strides = array<i32>} : memref<144x2xf32, #tpu.memory_space<vmem>>, vector<16x1xf32>,
    %133 = vector.extract_strided_slice %105 {offsets = [0, 16], sizes = [16, 16], strides = [1, 1]} : vector<16x32xf32> to vector<16x16xf32>
    %cst_77 = arith.constant dense<0.000000e+00> : vector<16x9xf32>
    %134 = tpu.matmul %133, %112, %cst_77 {dimension_numbers = #tpu.dot_dimension_numbers<[1], [0], [0], [1], [0, 0, 1, 1], [], []>} : vector<16x16xf32>, vector<16x9xf32>, vector<16x9xf32> -> vector<16x9xf32>
    %135 = vector.extract_strided_slice %134 {offsets = [0, 0], sizes = [16, 1], strides = [1, 1]} : vector<16x9xf32> to vector<16x1xf32>
    %c0_78 = arith.constant 0 : index
    %c1 = arith.constant 1 : index
    %136 = vector.load %arg9[%c0_78, %c1] : memref<144x2xf32, #tpu.memory_space<vmem>>, vector<16x1xf32>
    tpu.vector_store %arg9[%c0_78, %c1], %135 {strides = array<i32>} : memref<144x2xf32, #tpu.memory_space<vmem>>, vector<16x1xf32>,
    %137 = vector.extract_strided_slice %134 {offsets = [0, 1], sizes = [16, 1], strides = [1, 1]} : vector<16x9xf32> to vector<16x1xf32>
    %c16_79 = arith.constant 16 : index
    %c1_80 = arith.constant 1 : index
    %138 = vector.load %arg9[%c16_79, %c1_80] : memref<144x2xf32, #tpu.memory_space<vmem>>, vector<16x1xf32>
    tpu.vector_store %arg9[%c16_79, %c1_80], %137 {strides = array<i32>} : memref<144x2xf32, #tpu.memory_space<vmem>>, vector<16x1xf32>,
    %139 = vector.extract_strided_slice %134 {offsets = [0, 2], sizes = [16, 1], strides = [1, 1]} : vector<16x9xf32> to vector<16x1xf32>
    %c32_81 = arith.constant 32 : index
    %c1_82 = arith.constant 1 : index
    %140 = vector.load %arg9[%c32_81, %c1_82] : memref<144x2xf32, #tpu.memory_space<vmem>>, vector<16x1xf32>
    tpu.vector_store %arg9[%c32_81, %c1_82], %139 {strides = array<i32>} : memref<144x2xf32, #tpu.memory_space<vmem>>, vector<16x1xf32>,
    %141 = vector.extract_strided_slice %134 {offsets = [0, 3], sizes = [16, 1], strides = [1, 1]} : vector<16x9xf32> to vector<16x1xf32>
    %c48_83 = arith.constant 48 : index
    %c1_84 = arith.constant 1 : index
    %142 = vector.load %arg9[%c48_83, %c1_84] : memref<144x2xf32, #tpu.memory_space<vmem>>, vector<16x1xf32>
    tpu.vector_store %arg9[%c48_83, %c1_84], %141 {strides = array<i32>} : memref<144x2xf32, #tpu.memory_space<vmem>>, vector<16x1xf32>,
    %143 = vector.extract_strided_slice %134 {offsets = [0, 4], sizes = [16, 1], strides = [1, 1]} : vector<16x9xf32> to vector<16x1xf32>
    %c64_85 = arith.constant 64 : index
    %c1_86 = arith.constant 1 : index
    %144 = vector.load %arg9[%c64_85, %c1_86] : memref<144x2xf32, #tpu.memory_space<vmem>>, vector<16x1xf32>
    tpu.vector_store %arg9[%c64_85, %c1_86], %143 {strides = array<i32>} : memref<144x2xf32, #tpu.memory_space<vmem>>, vector<16x1xf32>,
    %145 = vector.extract_strided_slice %134 {offsets = [0, 5], sizes = [16, 1], strides = [1, 1]} : vector<16x9xf32> to vector<16x1xf32>
    %c80_87 = arith.constant 80 : index
    %c1_88 = arith.constant 1 : index
    %146 = vector.load %arg9[%c80_87, %c1_88] : memref<144x2xf32, #tpu.memory_space<vmem>>, vector<16x1xf32>
    tpu.vector_store %arg9[%c80_87, %c1_88], %145 {strides = array<i32>} : memref<144x2xf32, #tpu.memory_space<vmem>>, vector<16x1xf32>,
    %147 = vector.extract_strided_slice %134 {offsets = [0, 6], sizes = [16, 1], strides = [1, 1]} : vector<16x9xf32> to vector<16x1xf32>
    %c96_89 = arith.constant 96 : index
    %c1_90 = arith.constant 1 : index
    %148 = vector.load %arg9[%c96_89, %c1_90] : memref<144x2xf32, #tpu.memory_space<vmem>>, vector<16x1xf32>
    tpu.vector_store %arg9[%c96_89, %c1_90], %147 {strides = array<i32>} : memref<144x2xf32, #tpu.memory_space<vmem>>, vector<16x1xf32>,
    %149 = vector.extract_strided_slice %134 {offsets = [0, 7], sizes = [16, 1], strides = [1, 1]} : vector<16x9xf32> to vector<16x1xf32>
    %c112_91 = arith.constant 112 : index
    %c1_92 = arith.constant 1 : index
    %150 = vector.load %arg9[%c112_91, %c1_92] : memref<144x2xf32, #tpu.memory_space<vmem>>, vector<16x1xf32>
    tpu.vector_store %arg9[%c112_91, %c1_92], %149 {strides = array<i32>} : memref<144x2xf32, #tpu.memory_space<vmem>>, vector<16x1xf32>,
    %151 = vector.extract_strided_slice %134 {offsets = [0, 8], sizes = [16, 1], strides = [1, 1]} : vector<16x9xf32> to vector<16x1xf32>
    %c128_93 = arith.constant 128 : index
    %c1_94 = arith.constant 1 : index
    %152 = vector.load %arg9[%c128_93, %c1_94] : memref<144x2xf32, #tpu.memory_space<vmem>>, vector<16x1xf32>
    tpu.vector_store %arg9[%c128_93, %c1_94], %151 {strides = array<i32>} : memref<144x2xf32, #tpu.memory_space<vmem>>, vector<16x1xf32>,
    %c0_95 = arith.constant 0 : index
    %c0_96 = arith.constant 0 : index
    %153 = vector.load %arg3[%c0_95, %c0_96] : memref<1x144xf32, #tpu.memory_space<vmem>>, vector<1x144xf32>
    %c0_97 = arith.constant 0 : index
    %c0_98 = arith.constant 0 : index
    %154 = vector.load %arg9[%c0_97, %c0_98] : memref<144x2xf32, #tpu.memory_space<vmem>>, vector<144x2xf32>
    %cst_99 = arith.constant dense<0.000000e+00> : vector<1x2xf32>
    %155 = tpu.matmul %153, %154, %cst_99 {dimension_numbers = #tpu.dot_dimension_numbers<[1], [0], [0], [1], [0, 0, 1, 1], [], []>} : vector<1x144xf32>, vector<144x2xf32>, vector<1x2xf32> -> vector<1x2xf32>
    %156 = vector.extract_strided_slice %0 {offsets = [0, 4], sizes = [1, 1], strides = [1, 1]} : vector<16x6xf32> to vector<1x1xf32>
    %157 = vector.extract_strided_slice %0 {offsets = [0, 5], sizes = [1, 1], strides = [1, 1]} : vector<16x6xf32> to vector<1x1xf32>
    %cst_100 = arith.constant dense<0.000000e+00> : vector<1xf32>
    %158 = vector.multi_reduction <add>, %155, %cst_100 [1] : vector<1x2xf32> to vector<1xf32>
    %159 = vector.shape_cast %158 : vector<1xf32> to vector<1x1xf32>
    %cst_101 = arith.constant 2.000000e+00 : f32
    %160 = vector.broadcast %cst_101 : f32 to vector<1x1xf32>
    %161 = arith.divf %159, %160 : vector<1x1xf32>
    %162 = vector.broadcast %161 : vector<1x1xf32> to vector<1x2xf32>
    %163 = arith.subf %155, %162 : vector<1x2xf32>
    %164 = arith.mulf %163, %163 : vector<1x2xf32>
    %cst_102 = arith.constant dense<0.000000e+00> : vector<1xf32>
    %165 = vector.multi_reduction <add>, %164, %cst_102 [1] : vector<1x2xf32> to vector<1xf32>
    %166 = vector.shape_cast %165 : vector<1xf32> to vector<1x1xf32>
    %cst_103 = arith.constant 2.000000e+00 : f32
    %167 = vector.broadcast %cst_103 : f32 to vector<1x1xf32>
    %168 = arith.divf %166, %167 : vector<1x1xf32>
    %cst_104 = arith.constant 9.99999974E-6 : f32
    %169 = vector.broadcast %cst_104 : f32 to vector<1x1xf32>
    %170 = arith.addf %168, %169 : vector<1x1xf32>
    %171 = math.rsqrt %170 : vector<1x1xf32>
    %172 = arith.mulf %156, %171 : vector<1x1xf32>
    %173 = vector.broadcast %172 : vector<1x1xf32> to vector<1x2xf32>
    %174 = arith.mulf %163, %173 : vector<1x2xf32>
    %175 = vector.broadcast %157 : vector<1x1xf32> to vector<1x2xf32>
    %176 = arith.addf %174, %175 : vector<1x2xf32>
    %cst_105 = arith.constant 0.000000e+00 : f32
    %177 = vector.broadcast %cst_105 : f32 to vector<1x2xf32>
    %178 = arith.cmpf oge, %176, %177 : vector<1x2xf32>
    %cst_106 = arith.constant 2.000000e-01 : f32
    %179 = vector.broadcast %cst_106 : f32 to vector<1x2xf32>
    %180 = arith.mulf %179, %176 : vector<1x2xf32>
    %181 = arith.select %178, %176, %180 : vector<1x2xi1>, vector<1x2xf32>
    %c0_107 = arith.constant 0 : index
    %c0_108 = arith.constant 0 : index
    %182 = vector.load %arg7[%c0_107, %c0_108] : memref<1x2xf32, #tpu.memory_space<vmem>>, vector<1x2xf32>
    tpu.vector_store %arg7[%c0_107, %c0_108], %181 {strides = array<i32>} : memref<1x2xf32, #tpu.memory_space<vmem>>, vector<1x2xf32>,
    return
  }
}

</mosaic_0001>

<bundles_post_ra>
// kernel: _discriminator_fused.1
= control target key start
LH: loop header
LB: loop body
LE: loop exit
PB: predicated region body
PF: predicated region fallthrough
CT: control target
= control target key end

     0   :  { %vm42_vm0 = vcmask 1040384   ;;  %vm1696_vm1 = vmmov 1   ;;  %v1697_v7 = vmov 0.0   ;;  %s2188_s0 = inlined_call_operand.vmem [shape: f32[9,512], index: 0, kind: input, shape index: {}]   ;;  %s2189_s1 = inlined_call_operand.vmem [shape: f32[8,9], index: 1, kind: input, shape index: {}]   ;;  %s2190_s2 = inlined_call_operand.vmem [shape: f32[16,72], index: 2, kind: input, shape index: {}]   ;;  %s2191_s3 = inlined_call_operand.vmem [shape: f32[1,144], index: 3, kind: input, shape index: {}]   ;;  %s2192_s4 = inlined_call_operand.vmem [shape: f32[16,6], index: 4, kind: input, shape index: {}]   ;;  %s2193_s5 = inlined_call_operand.vmem [shape: s32[1,144], index: 5, kind: input, shape index: {}]   ;;  %s2194_s6 = inlined_call_operand.vmem [shape: s32[1,9], index: 6, kind: input, shape index: {}]   ;;  %s2195_s7 = inlined_call_operand.hbm [shape: f32[1,2], index: 7, kind: output, shape index: {}]  }
   0x1   :  { %v31_v0 = vld [vmem:[%s2188_s0 + $0x8] sm:$0xff]  ;;  %v30_v2 = vld [vmem:[%s2188_s0] sm:$0xff]  ;;  %vm1772_vm2 = vmpackc.low %vm42_vm0, %vm1696_vm1  ;;  %119 = vmatprep.mubr.f32.mxu0 %v1697_v7 }
   0x2   :  { %v35_v1 = vld [vmem:[%s2188_s0 + $0x28] sm:$0x1]  ;;  %v34_v5 = vld [vmem:[%s2188_s0 + $0x20] sm:$0x1]  ;;  %v33_v8 = vld [vmem:[%s2188_s0 + $0x18] sm:$0xff] }
   0x3   :  { %v1437_v3 = vpack.c.bf16 %v35_v1, %v31_v0  ;;  %v1440_v6 = vpack.c.bf16 %v34_v5, %v30_v2  ;;  %v37_v9 = vld [vmem:[%s2188_s0 + $0x38] sm:$0x1]  ;;  %v32_v10 = vld [vmem:[%s2188_s0 + $0x10] sm:$0xff] }
   0x4   :  { %v1443_v11 = vpack.c.bf16 %v37_v9, %v33_v8  ;;  %v36_v12 = vld [vmem:[%s2188_s0 + $0x30] sm:$0x1] }
   0x5   :  { %1439 = vmatprep.subr.msk.bf16.mxu0 %vm1772_vm2, %v1437_v3 }
   0x6   :  { %12 = vsyncpa [#allocation5], 0  ;;  %1442 = vmatpush1.bf16.msk.msra.mxu0 %vm1772_vm2, %v1440_v6  ;;  %v29_v13 = vld [vmem:[%s2189_s1] sm:$0xff]  ;;  %vm38_vm3 = vcmask 72704   ;;  %v1446_v14 = vpack.c.bf16 %v36_v12, %v32_v10  ;;  %v1698_v35 = vmov 0   ;;  %v252_v36 = vlaneseq  ;;  %s1701_s20 = smov 16  }
   0x7   :  { %1445 = vmatprep.subr.msk.bf16.mxu0 %vm1772_vm2, %v1443_v11  ;;  %1655 = vset.pattern.permute.xlu1 %v1698_v35  ;;  %v251_v38 = vld [vmem:[%s2193_s5] sm:$0x3]  ;;  %v1699_v48 = vmov 1.0|1.0   ;;  %s1702_s21 = smov 112   ;;  %s1703_s22 = smov 96  }
   0x8   :  { %v1818_v37 = vshrl.u32 %v252_v36, 7  ;;  %v1979_v10 = vld [vmem:[%s2192_s4] sm:$0xff]  ;;  %s1704_s23 = smov 48   ;;  %s1705_s24 = smov 80  }
   0x9   :  { %1239 = vmatmul.mubr.msk.f32.vlgmr.msra.gmra.mrb[0].mxu0 %vm38_vm3, %v29_v13  ;;  %s1706_s25 = smov 64   ;;  %s1707_s26 = smov 32  }
   0xa   :  { %1448 = vmatpush1.bf16.msk.msra.mxu0 %vm1772_vm2, %v1446_v14  ;;  %190 = vmatprep.mubr.f32.mxu0 %v1697_v7  ;;  %v1824_v39 = vadd.s32 8, %v1818_v37  ;;  %v287_v40 = vsub.s32 0, %v1818_v37  ;;  %v291_v41 = vsub.s32 1, %v1818_v37  ;;  %v255_v42 = vadd.s32 16, %v1818_v37  ;;  %s1712_s11 = smov 125   ;;  %s1713_s12 = smov 124  }
   0xb   :  { %v256_v43 = vadd.s32 24, %v1818_v37  ;;  %v257_v46 = vadd.s32 32, %v1818_v37  ;;  %v258_v47 = vadd.s32 40, %v1818_v37  ;;  %v259_v49 = vadd.s32 48, %v1818_v37  ;;  %s1714_s13 = smov 123   ;;  %s1715_s14 = smov 122  }
   0xc   :  { %v1832_v44 = vrot.slane %v251_v38, %v287_v40  ;;  %v1836_v45 = vrot.slane %v251_v38, %v291_v41  ;;  %v260_v50 = vadd.s32 56, %v1818_v37  ;;  %v261_v51 = vadd.s32 64, %v1818_v37  ;;  %s1716_s15 = smov 121   ;;  %s1717_s16 = smov 1  }
   0xd   :  { %1242 = vmatmul.mubr.msk.f32.vlgmr.msra.gmra.mrb[2].mxu0 %vm38_vm3, %v29_v13  ;;  %v262_v52 = vadd.s32 72, %v1818_v37  ;;  %v263_v53 = vadd.s32 80, %v1818_v37  ;;  %v264_v54 = vadd.s32 88, %v1818_v37  ;;  %v265_v55 = vadd.s32 96, %v1818_v37  ;;  %s1719_s17 = smov 120  }
   0xe   :  { %vm294_vm4 = vcmp.eq.s32.totalorder %v1818_v37, %v1836_v45  ;;  %vm296_vm5 = vcmp.eq.s32.totalorder %v1824_v39, %v1836_v45  ;;  %vm293_vm6 = vcmp.eq.s32.totalorder %v1818_v37, %v1832_v44  ;;  %vm295_vm7 = vcmp.eq.s32.totalorder %v1824_v39, %v1832_v44 }
   0xf   :  { %vm1449_vm8 = vmpackc.low %vm296_vm5, %vm294_vm4  ;;  %vm298_vm9 = vcmp.eq.s32.totalorder %v255_v42, %v1836_v45  ;;  %vm300_vm10 = vcmp.eq.s32.totalorder %v256_v43, %v1836_v45  ;;  %vm297_vm11 = vcmp.eq.s32.totalorder %v255_v42, %v1832_v44  ;;  %vm299_vm12 = vcmp.eq.s32.totalorder %v256_v43, %v1832_v44 }
  0x10   :  { %1450 = vmatprep.subr.msk.bf16.mxu0 %vm1449_vm8, %v1699_v48  ;;  %1514 = vmatprep.subr.msk.bf16.mxu1 %vm1449_vm8, %v1699_v48  ;;  %vm1451_vm13 = vmpackc.low %vm295_vm7, %vm293_vm6  ;;  %vm302_vm14 = vcmp.eq.s32.totalorder %v257_v46, %v1836_v45  ;;  %vm304_vm15 = vcmp.eq.s32.totalorder %v258_v47, %v1836_v45  ;;  %vm301_vm3 = vcmp.eq.s32.totalorder %v257_v46, %v1832_v44  ;;  %v266_v56 = vadd.s32 104, %v1818_v37 }
  0x11   :  { %1452 = vmatpush1.bf16.msk.msra.mxu0 %vm1451_vm13, %v1699_v48  ;;  %1516 = vmatpush1.bf16.msk.msra.mxu1 %vm1451_vm13, %v1699_v48  ;;  %vm1453_vm0 = vmpackc.low %vm300_vm10, %vm298_vm9  ;;  %vm303_vm4 = vcmp.eq.s32.totalorder %v258_v47, %v1832_v44  ;;  %vm306_vm5 = vcmp.eq.s32.totalorder %v259_v49, %v1836_v45  ;;  %vm308_vm6 = vcmp.eq.s32.totalorder %v260_v50, %v1836_v45  ;;  %v267_v57 = vadd.s32 112, %v1818_v37 }
  0x12   :  { %1454 = vmatprep.subr.msk.bf16.mxu0 %vm1453_vm0, %v1699_v48  ;;  %1518 = vmatprep.subr.msk.bf16.mxu1 %vm1453_vm0, %v1699_v48  ;;  %vm1455_vm1 = vmpackc.low %vm299_vm12, %vm297_vm11  ;;  %vm305_vm9 = vcmp.eq.s32.totalorder %v259_v49, %v1832_v44  ;;  %vm307_vm10 = vcmp.eq.s32.totalorder %v260_v50, %v1832_v44  ;;  %vm310_vm11 = vcmp.eq.s32.totalorder %v261_v51, %v1836_v45  ;;  %v268_v58 = vadd.s32 120, %v1818_v37 }
  0x13   :  { %vm1457_vm2 = vmpackc.low %vm304_vm15, %vm302_vm14  ;;  %vm312_vm12 = vcmp.eq.s32.totalorder %v262_v52, %v1836_v45  ;;  %vm309_vm15 = vcmp.eq.s32.totalorder %v261_v51, %v1832_v44  ;;  %vm311_vm0 = vcmp.eq.s32.totalorder %v262_v52, %v1832_v44  ;;  %v269_v59 = vadd.s32 128, %v1818_v37 }
  0x14   :  { %vm1459_vm7 = vmpackc.low %vm303_vm4, %vm301_vm3  ;;  %v270_v60 = vadd.s32 136, %v1818_v37  ;;  %v271_v61 = vadd.s32 144, %v1818_v37  ;;  %v272_v62 = vadd.s32 152, %v1818_v37  ;;  %v273_v63 = vadd.s32 160, %v1818_v37 }
  0x15   :  { %1456 = vmatpush1.bf16.msk.msra.mxu0 %vm1455_vm1, %v1699_v48  ;;  %1520 = vmatpush1.bf16.msk.msra.mxu1 %vm1455_vm1, %v1699_v48  ;;  %vm1461_vm8 = vmpackc.low %vm308_vm6, %vm306_vm5  ;;  %vm314_vm1 = vcmp.eq.s32.totalorder %v263_v53, %v1836_v45  ;;  %vm313_vm5 = vcmp.eq.s32.totalorder %v263_v53, %v1832_v44  ;;  %vm315_vm6 = vcmp.eq.s32.totalorder %v264_v54, %v1832_v44  ;;  %v274_v0 = vadd.s32 168, %v1818_v37 }
  0x16   :  { %1458 = vmatprep.subr.msk.bf16.mxu0 %vm1457_vm2, %v1699_v48  ;;  %1522 = vmatprep.subr.msk.bf16.mxu1 %vm1457_vm2, %v1699_v48  ;;  %vm1463_vm13 = vmpackc.low %vm307_vm10, %vm305_vm9  ;;  %vm316_vm2 = vcmp.eq.s32.totalorder %v264_v54, %v1836_v45  ;;  %v275_v1 = vadd.s32 176, %v1818_v37  ;;  %v276_v2 = vadd.s32 184, %v1818_v37  ;;  %v277_v3 = vadd.s32 192, %v1818_v37 }
  0x17   :  { %vm1465_vm14 = vmpackc.low %vm312_vm12, %vm310_vm11  ;;  %vm317_vm11 = vcmp.eq.s32.totalorder %v265_v55, %v1832_v44  ;;  %vm319_vm12 = vcmp.eq.s32.totalorder %v266_v56, %v1832_v44  ;;  %v278_v4 = vadd.s32 200, %v1818_v37  ;;  %v279_v5 = vadd.s32 208, %v1818_v37 }
  0x18   :  { %vm1467_vm3 = vmpackc.low %vm311_vm0, %vm309_vm15  ;;  %v280_v6 = vadd.s32 216, %v1818_v37  ;;  %v281_v13 = vadd.s32 224, %v1818_v37  ;;  %v282_v14 = vadd.s32 232, %v1818_v37 }
  0x19   :  { %1460 = vmatpush1.bf16.msk.msra.mxu0 %vm1459_vm7, %v1699_v48  ;;  %1524 = vmatpush1.bf16.msk.msra.mxu1 %vm1459_vm7, %v1699_v48  ;;  %vm1469_vm4 = vmpackc.low %vm316_vm2, %vm314_vm1  ;;  %vm318_vm7 = vcmp.eq.s32.totalorder %v265_v55, %v1836_v45  ;;  %vm321_vm1 = vcmp.eq.s32.totalorder %v267_v57, %v1832_v44  ;;  %vm323_vm2 = vcmp.eq.s32.totalorder %v268_v58, %v1832_v44 }
  0x1a   :  { %1462 = vmatprep.subr.msk.bf16.mxu0 %vm1461_vm8, %v1699_v48  ;;  %1526 = vmatprep.subr.msk.bf16.mxu1 %vm1461_vm8, %v1699_v48  ;;  %vm320_vm8 = vcmp.eq.s32.totalorder %v266_v56, %v1836_v45  ;;  %vm1471_vm9 = vmpackc.low %vm315_vm6, %vm313_vm5 }
  0x1b   :  { %vm1473_vm10 = vmpackc.low %vm320_vm8, %vm318_vm7  ;;  %vm325_vm7 = vcmp.eq.s32.totalorder %v269_v59, %v1832_v44  ;;  %vm327_vm8 = vcmp.eq.s32.totalorder %v270_v60, %v1832_v44 }
  0x1c   :  { %vm1475_vm15 = vmpackc.low %vm319_vm12, %vm317_vm11 }
  0x1d   :  { %1464 = vmatpush1.bf16.msk.msra.mxu0 %vm1463_vm13, %v1699_v48  ;;  %1528 = vmatpush1.bf16.msk.msra.mxu1 %vm1463_vm13, %v1699_v48  ;;  %vm322_vm13 = vcmp.eq.s32.totalorder %v267_v57, %v1836_v45  ;;  %vm1479_vm5 = vmpackc.low %vm323_vm2, %vm321_vm1 }
  0x1e   :  { %1466 = vmatprep.subr.msk.bf16.mxu0 %vm1465_vm14, %v1699_v48  ;;  %1530 = vmatprep.subr.msk.bf16.mxu1 %vm1465_vm14, %v1699_v48  ;;  %vm324_vm14 = vcmp.eq.s32.totalorder %v268_v58, %v1836_v45  ;;  %vm1483_vm11 = vmpackc.low %vm327_vm8, %vm325_vm7 }
  0x1f   :  { %vm1477_vm0 = vmpackc.low %vm324_vm14, %vm322_vm13  ;;  %vm329_vm13 = vcmp.eq.s32.totalorder %v271_v61, %v1832_v44  ;;  %vm331_vm14 = vcmp.eq.s32.totalorder %v272_v62, %v1832_v44 }
  0x20   :  { %vm1487_vm1 = vmpackc.low %vm331_vm14, %vm329_vm13 }
  0x21   :  { %1468 = vmatpush1.bf16.msk.msra.mxu0 %vm1467_vm3, %v1699_v48  ;;  %1532 = vmatpush1.bf16.msk.msra.mxu1 %vm1467_vm3, %v1699_v48  ;;  %vm326_vm3 = vcmp.eq.s32.totalorder %v269_v59, %v1836_v45 }
  0x22   :  { %1470 = vmatprep.subr.msk.bf16.mxu0 %vm1469_vm4, %v1699_v48  ;;  %1534 = vmatprep.subr.msk.bf16.mxu1 %vm1469_vm4, %v1699_v48  ;;  %vm328_vm4 = vcmp.eq.s32.totalorder %v270_v60, %v1836_v45 }
  0x23   :  { %vm1481_vm6 = vmpackc.low %vm328_vm4, %vm326_vm3  ;;  %vm333_vm3 = vcmp.eq.s32.totalorder %v273_v63, %v1832_v44  ;;  %vm335_vm4 = vcmp.eq.s32.totalorder %v274_v0, %v1832_v44 }
  0x24   :  { %vm1491_vm7 = vmpackc.low %vm335_vm4, %vm333_vm3 }
  0x25   :  { %1472 = vmatpush1.bf16.msk.msra.mxu0 %vm1471_vm9, %v1699_v48  ;;  %1536 = vmatpush1.bf16.msk.msra.mxu1 %vm1471_vm9, %v1699_v48  ;;  %vm330_vm9 = vcmp.eq.s32.totalorder %v271_v61, %v1836_v45 }
  0x26   :  { %1474 = vmatprep.subr.msk.bf16.mxu0 %vm1473_vm10, %v1699_v48  ;;  %1538 = vmatprep.subr.msk.bf16.mxu1 %vm1473_vm10, %v1699_v48  ;;  %vm332_vm10 = vcmp.eq.s32.totalorder %v272_v62, %v1836_v45 }
  0x27   :  { %vm1485_vm12 = vmpackc.low %vm332_vm10, %vm330_vm9  ;;  %vm337_vm9 = vcmp.eq.s32.totalorder %v275_v1, %v1832_v44  ;;  %vm339_vm10 = vcmp.eq.s32.totalorder %v276_v2, %v1832_v44 }
  0x28   :  { %vm1495_vm13 = vmpackc.low %vm339_vm10, %vm337_vm9  ;;  %vm352_vm9 = vcmp.eq.s32.totalorder %v282_v14, %v1836_v45  ;;  %vm349_vm10 = vcmp.eq.s32.totalorder %v281_v13, %v1832_v44 }
  0x29   :  { %1476 = vmatpush1.bf16.msk.msra.mxu0 %vm1475_vm15, %v1699_v48  ;;  %1540 = vmatpush1.bf16.msk.msra.mxu1 %vm1475_vm15, %v1699_v48  ;;  %vm334_vm15 = vcmp.eq.s32.totalorder %v273_v63, %v1836_v45 }
  0x2a   :  { %1478 = vmatprep.subr.msk.bf16.mxu0 %vm1477_vm0, %v1699_v48  ;;  %1542 = vmatprep.subr.msk.bf16.mxu1 %vm1477_vm0, %v1699_v48  ;;  %vm336_vm0 = vcmp.eq.s32.totalorder %v274_v0, %v1836_v45 }
  0x2b   :  { %vm1489_vm2 = vmpackc.low %vm336_vm0, %vm334_vm15  ;;  %vm341_vm15 = vcmp.eq.s32.totalorder %v277_v3, %v1832_v44  ;;  %vm343_vm0 = vcmp.eq.s32.totalorder %v278_v4, %v1832_v44 }
  0x2c   :  { %vm1499_vm3 = vmpackc.low %vm343_vm0, %vm341_vm15 }
  0x2d   :  { %1480 = vmatpush1.bf16.msk.msra.mxu0 %vm1479_vm5, %v1699_v48  ;;  %1544 = vmatpush1.bf16.msk.msra.mxu1 %vm1479_vm5, %v1699_v48  ;;  %vm338_vm5 = vcmp.eq.s32.totalorder %v275_v1, %v1836_v45 }
  0x2e   :  { %1482 = vmatprep.subr.msk.bf16.mxu0 %vm1481_vm6, %v1699_v48  ;;  %1546 = vmatprep.subr.msk.bf16.mxu1 %vm1481_vm6, %v1699_v48  ;;  %vm340_vm6 = vcmp.eq.s32.totalorder %v276_v2, %v1836_v45 }
  0x2f   :  { %vm1493_vm8 = vmpackc.low %vm340_vm6, %vm338_vm5  ;;  %vm345_vm5 = vcmp.eq.s32.totalorder %v279_v5, %v1832_v44  ;;  %vm347_vm6 = vcmp.eq.s32.totalorder %v280_v6, %v1832_v44 }
  0x31   :  { %1484 = vmatpush1.bf16.msk.msra.mxu0 %vm1483_vm11, %v1699_v48  ;;  %1548 = vmatpush1.bf16.msk.msra.mxu1 %vm1483_vm11, %v1699_v48  ;;  %vm342_vm11 = vcmp.eq.s32.totalorder %v277_v3, %v1836_v45 }
  0x32   :  { %1486 = vmatprep.subr.msk.bf16.mxu0 %vm1485_vm12, %v1699_v48  ;;  %1550 = vmatprep.subr.msk.bf16.mxu1 %vm1485_vm12, %v1699_v48  ;;  %vm344_vm12 = vcmp.eq.s32.totalorder %v278_v4, %v1836_v45 }
  0x33   :  { %vm1497_vm14 = vmpackc.low %vm344_vm12, %vm342_vm11  ;;  %vm351_vm11 = vcmp.eq.s32.totalorder %v282_v14, %v1832_v44 }
  0x35   :  { %1488 = vmatpush1.bf16.msk.msra.mxu0 %vm1487_vm1, %v1699_v48  ;;  %1552 = vmatpush1.bf16.msk.msra.mxu1 %vm1487_vm1, %v1699_v48  ;;  %vm346_vm1 = vcmp.eq.s32.totalorder %v279_v5, %v1836_v45 }
  0x36   :  { %1490 = vmatprep.subr.msk.bf16.mxu0 %vm1489_vm2, %v1699_v48  ;;  %1554 = vmatprep.subr.msk.bf16.mxu1 %vm1489_vm2, %v1699_v48  ;;  %vm348_vm2 = vcmp.eq.s32.totalorder %v280_v6, %v1836_v45 }
  0x37   :  { %vm1501_vm4 = vmpackc.low %vm348_vm2, %vm346_vm1 }
  0x39   :  { %1492 = vmatpush1.bf16.msk.msra.mxu0 %vm1491_vm7, %v1699_v48  ;;  %1556 = vmatpush1.bf16.msk.msra.mxu1 %vm1491_vm7, %v1699_v48  ;;  %vm1503_vm7 = vmpackc.low %vm347_vm6, %vm345_vm5 }
  0x3a   :  { %1494 = vmatprep.subr.msk.bf16.mxu0 %vm1493_vm8, %v1699_v48  ;;  %1558 = vmatprep.subr.msk.bf16.mxu1 %vm1493_vm8, %v1699_v48  ;;  %vm350_vm8 = vcmp.eq.s32.totalorder %v281_v13, %v1836_v45 }
  0x3b   :  { %vm1505_vm12 = vmpackc.low %vm352_vm9, %vm350_vm8  ;;  %vm492_vm8 = vcmask 130048   ;;  %vm642_vm9 = vcmask 588800  }
  0x3d   :  { %1496 = vmatpush1.bf16.msk.msra.mxu0 %vm1495_vm13, %v1699_v48  ;;  %1560 = vmatpush1.bf16.msk.msra.mxu1 %vm1495_vm13, %v1699_v48  ;;  %vm1507_vm13 = vmpackc.low %vm351_vm11, %vm349_vm10  ;;  %vm599_vm10 = vcmask 261248   ;;  %vm724_vm11 = vcmask 261120  }
  0x3e   :  { %1498 = vmatprep.subr.msk.bf16.mxu0 %vm1497_vm14, %v1699_v48  ;;  %1562 = vmatprep.subr.msk.bf16.mxu1 %vm1497_vm14, %v1699_v48 }
  0x41   :  { %1500 = vmatpush1.bf16.msk.msra.mxu0 %vm1499_vm3, %v1699_v48  ;;  %1564 = vmatpush1.bf16.msk.msra.mxu1 %vm1499_vm3, %v1699_v48 }
  0x42   :  { %1502 = vmatprep.subr.msk.bf16.mxu0 %vm1501_vm4, %v1699_v48  ;;  %1566 = vmatprep.subr.msk.bf16.mxu1 %vm1501_vm4, %v1699_v48 }
  0x45   :  { %1504 = vmatpush1.bf16.msk.msra.mxu0 %vm1503_vm7, %v1699_v48  ;;  %1568 = vmatpush1.bf16.msk.msra.mxu1 %vm1503_vm7, %v1699_v48 }
  0x46   :  { %1506 = vmatprep.subr.msk.bf16.mxu0 %vm1505_vm12, %v1699_v48  ;;  %1570 = vmatprep.subr.msk.bf16.mxu1 %vm1505_vm12, %v1699_v48 }
  0x49   :  { %1508 = vmatpush1.bf16.msk.msra.mxu0 %vm1507_vm13, %v1699_v48  ;;  %1572 = vmatpush1.bf16.msk.msra.mxu1 %vm1507_vm13, %v1699_v48 }
  0xdc   :  { %v121_v15 = vpop.f32.mrb[0].mxu0 }
  0xdd   :  { %v123_v16 = vpop.f32.mrb[1].mxu0 }
  0xde   :  { %v197_v17 = vadd.f32 %v123_v16, %v121_v15 }
  0xe0   :  { %v192_v18 = vpop.f32.mrb[2].mxu0 }
  0xe1   :  { %v198_v19 = vadd.f32 %v197_v17, %v192_v18  ;;  %v194_v20 = vpop.f32.mrb[3].mxu0  ;;  %v1700_v17 = vmov 1  }
  0xe3   :  { %v199_v21 = vadd.f32 %v198_v19, %v194_v20 }
  0xe5   :  { %200 = vadd.xlane.f32.xlu0 %v199_v21 }
 0x172   :  { %v201_v22 = vpop.xlane.xlu0 %200 }
 0x173   :  { %v203_v23 = vmul.f32 0.001953125, %v201_v22 }
 0x175   :  { %v1802_v24 = vsub.f32 %v121_v15, %v203_v23  ;;  %v1804_v25 = vsub.f32 %v123_v16, %v203_v23  ;;  %v1806_v26 = vsub.f32 %v192_v18, %v203_v23  ;;  %v1808_v27 = vsub.f32 %v194_v20, %v203_v23 }
 0x176   :  { %v283_v15 = vadd.s32 240, %v1818_v37  ;;  %v284_v16 = vadd.s32 248, %v1818_v37 }
 0x177   :  { %v208_v28 = vmul.f32 %v1802_v24, %v1802_v24  ;;  %v209_v29 = vmul.f32 %v1804_v25, %v1804_v25  ;;  %v210_v30 = vmul.f32 %v1806_v26, %v1806_v26  ;;  %v211_v32 = vmul.f32 %v1808_v27, %v1808_v27 }
 0x178   :  { %vm354_vm14 = vcmp.eq.s32.totalorder %v283_v15, %v1836_v45  ;;  %vm356_vm15 = vcmp.eq.s32.totalorder %v284_v16, %v1836_v45  ;;  %vm353_vm0 = vcmp.eq.s32.totalorder %v283_v15, %v1832_v44  ;;  %vm355_vm2 = vcmp.eq.s32.totalorder %v284_v16, %v1832_v44  ;;  %v631_v44 = vld [vmem:[%s2190_s2] sm:$0xff] }
 0x179   :  { %v212_v31 = vadd.f32 %v209_v29, %v208_v28  ;;  %vm1509_vm1 = vmpackc.low %vm356_vm15, %vm354_vm14 }
 0x17a   :  { %1510 = vmatprep.subr.msk.bf16.mxu0 %vm1509_vm1, %v1699_v48  ;;  %1574 = vmatprep.subr.msk.bf16.mxu1 %vm1509_vm1, %v1699_v48  ;;  %vm1511_vm3 = vmpackc.low %vm355_vm2, %vm353_vm0  ;;  %vm871_vm1 = vcmask 7168   ;;  %vm1031_vm2 = vcmask 15368  }
 0x17b   :  { %v213_v33 = vadd.f32 %v212_v31, %v210_v30  ;;  %1512 = vmatpush1.bf16.msk.msra.mxu0 %vm1511_vm3, %v1699_v48  ;;  %1576 = vmatpush1.bf16.msk.msra.mxu1 %vm1511_vm3, %v1699_v48  ;;  %vm1193_vm3 = vcmask 8192  }
 0x17d   :  { %v214_v34 = vadd.f32 %v213_v33, %v211_v32 }
 0x17f   :  { %215 = vadd.xlane.f32.xlu0 %v214_v34 }
 0x20c   :  { %v216_v7 = vpop.xlane.xlu0 %215 }
 0x20d   :  { %v217_v8 = vmul.f32 0.001953125, %v216_v7 }
 0x20f   :  { %v218_v9 = vadd.f32 1e-05, %v217_v8 }
 0x211   :  { %1664 = vrsqrt.f32 %v218_v9 }
 0x21b   :  { %v1665_v11 = vpop.eup %1664 }
 0x21c   :  { %v220_v12 = vmul.f32 %v1665_v11, %v1979_v10  ;;  %v632_v11 = vld [vmem:[%s2190_s2 + $0x8] sm:$0xff] }
 0x21e   :  { %223 = vperm.xlu1 %1655, %v220_v12  }
 0x222   :  { %1656 = vset.pattern.permute.xlu1 %v1700_v17 }
 0x223   :  { %232 = vperm.xlu1 %1656, %v1979_v10  }
 0x29d   :  { %v224_v18 = vpop.permute.xlu1 %223 }
 0x29e   :  { %v226_v19 = vmul.f32 %v224_v18, %v1802_v24  ;;  %v227_v20 = vmul.f32 %v224_v18, %v1804_v25  ;;  %v228_v21 = vmul.f32 %v224_v18, %v1806_v26  ;;  %v229_v22 = vmul.f32 %v224_v18, %v1808_v27 }
 0x2a2   :  { %v233_v23 = vpop.permute.xlu1 %232 }
 0x2a3   :  { %v235_v28 = vadd.f32 %v233_v23, %v226_v19  ;;  %v236_v29 = vadd.f32 %v233_v23, %v227_v20  ;;  %v237_v30 = vadd.f32 %v233_v23, %v228_v21  ;;  %v238_v31 = vadd.f32 %v233_v23, %v229_v22 }
 0x2a5   :  { %vm240_vm4 = vcmp.ge.f32.partialorder %v236_v29, 0.0  ;;  %v244_v32 = vmul.f32 0.2, %v236_v29  ;;  %vm242_vm5 = vcmp.ge.f32.partialorder %v238_v31, 0.0  ;;  %v246_v33 = vmul.f32 0.2, %v238_v31 }
 0x2a6   :  { %vm239_vm6 = vcmp.ge.f32.partialorder %v235_v28, 0.0  ;;  %v243_v34 = vmul.f32 0.2, %v235_v28  ;;  %vm241_vm7 = vcmp.ge.f32.partialorder %v237_v30, 0.0  ;;  %v245_v35 = vmul.f32 0.2, %v237_v30 }
 0x2a7   :  { %v248_v24 = vsel %vm240_vm4, %v236_v29, %v244_v32  ;;  %v250_v36 = vsel %vm242_vm5, %v238_v31, %v246_v33  ;;  %v1709_v31 = vmov 2  }
 0x2a8   :  { %485 = vmatprep.mubr.f32.mxu0 %v248_v24  ;;  %588 = vmatprep.mubr.f32.mxu1 %v250_v36  ;;  %v247_v25 = vsel %vm239_vm6, %v235_v28, %v243_v34  ;;  %v249_v26 = vsel %vm241_vm7, %v237_v30, %v245_v35  ;;  %v1708_v30 = vmov 3  }
 0x2a9   :  { %486 = vmatmul.mubr.f32.vlgmr.msra.gmra.mrb[4].mxu0 %v247_v25  ;;  %589 = vmatmul.mubr.f32.vlgmr.msra.gmra.mrb[0].mxu1 %v249_v26 }
 0x2aa   :  { %1420 = vmatprep.mubr.msk.f32.mxu0 %vm642_vm9, %v631_v44  ;;  %1658 = vset.pattern.permute.xlu1 %v1708_v30 }
 0x2ab   :  { %1657 = vset.pattern.permute.xlu0 %v1709_v31 }
 0x37c   :  { %v487_v27 = vpop.f32.mrb[4].mxu0  ;;  %v590_v38 = vpop.f32.mrb[0].mxu1 }
 0x37d   :  { %596 = vrot.lane.b32.xlu1 %v590_v38, %s1701_s20  ;;  %v592_v42 = vpop.f32.mrb[1].mxu1  ;;  %495 = vrot.lane.b32.xlu0 %v487_v27, %s1702_s21  ;;  %v489_v43 = vpop.f32.mrb[5].mxu0  ;;  %493 = vst.msk [vmem:[#allocation2] sm:$0xff] %vm492_vm8, %v487_v27 }
 0x37e   :  { %523 = vst.msk [vmem:[#allocation2 + $0x40] sm:$0xff] %vm492_vm8, %v489_v43  ;;  %v1373_v43 = vld [vmem:[%s2194_s6] ss:$0 sm:$0xff]  ;;  %s1711_s6 = smov 126  }
 0x37f   :  { %vm786_vm12 = vcmp.eq.s32.totalorder %v1818_v37, %v1373_v43  ;;  %vm787_vm13 = vcmp.eq.s32.totalorder %v1824_v39, %v1373_v43  ;;  %v1721_v37 = vmov 5  }
 0x380   :  { %vm2053_vm14 = vmpackc.low %vm787_vm13, %vm786_vm12 }
 0x381   :  { %499 = vrot.lane.b32.xlu1 %v487_v27, %s1703_s22  ;;  %511 = vrot.lane.b32.xlu0 %v487_v27, %s1704_s23 }
 0x385   :  { %503 = vrot.lane.b32.xlu1 %v487_v27, %s1705_s24  ;;  %614 = vrot.lane.b32.xlu0 %v590_v38, %s1706_s25 }
 0x389   :  { %602 = vrot.lane.b32.xlu1 %v590_v38, %s1702_s21  ;;  %519 = vrot.lane.b32.xlu0 %v487_v27, %s1701_s20 }
 0x38d   :  { %606 = vrot.lane.b32.xlu1 %v590_v38, %s1703_s22  ;;  %622 = vrot.lane.b32.xlu0 %v590_v38, %s1707_s26 }
 0x391   :  { %507 = vrot.lane.b32.xlu1 %v487_v27, %s1706_s25 }
 0x395   :  { %610 = vrot.lane.b32.xlu1 %v590_v38, %s1705_s24 }
 0x399   :  { %515 = vrot.lane.b32.xlu1 %v487_v27, %s1707_s26  ;;  %v28_v27 = vld [vmem:[%s2192_s4 + $0x8] sm:$0xff]  ;;  %s1710_s4 = smov 127  }
 0x39d   :  { %618 = vrot.lane.b32.xlu1 %v590_v38, %s1704_s23 }
 0x3a1   :  { %627 = vrot.lane.b32.xlu1 %v592_v42, %s1701_s20 }
 0x3ef   :  { %v597_v45 = vpop.permute.xlu1 %596  ;;  %v496_v46 = vpop.permute.xlu0 %495 }
 0x3f0   :  { %600 = vst.msk [vmem:[#allocation2] sm:$0xff] %vm599_vm10, %v597_v45 }
 0x3f1   :  { %498 = vst.msk [vmem:[#allocation2 + $0x8] sm:$0xff] %vm492_vm8, %v496_v46 }
 0x3f2   :  { %601 = vst.msk [vmem:[#allocation2 + $0x8] sm:$0xff] %vm599_vm10, %v590_v38 }
 0x3f3   :  { %v500_v47 = vpop.permute.xlu1 %499  ;;  %v512_v49 = vpop.permute.xlu0 %511 }
 0x3f4   :  { %502 = vst.msk [vmem:[#allocation2 + $0x10] sm:$0xff] %vm492_vm8, %v500_v47  ;;  %514 = vst.msk [vmem:[#allocation2 + $0x28] sm:$0xff] %vm492_vm8, %v512_v49 }
 0x3f7   :  { %v504_v50 = vpop.permute.xlu1 %503  ;;  %v615_v51 = vpop.permute.xlu0 %614  ;;  %v633_v52 = vld [vmem:[#allocation2] sm:$0xff] }
 0x3f8   :  { %506 = vst.msk [vmem:[#allocation2 + $0x18] sm:$0xff] %vm492_vm8, %v504_v50 }
 0x3f9   :  { %617 = vst.msk [vmem:[#allocation2 + $0x28] sm:$0xff] %vm599_vm10, %v615_v51  ;;  %v634_v53 = vld [vmem:[#allocation2 + $0x8] sm:$0xff] }
 0x3fa   :  { %v1577_v54 = vpack.c.bf16 %v634_v53, %v633_v52 }
 0x3fb   :  { %v603_v55 = vpop.permute.xlu1 %602  ;;  %v520_v56 = vpop.permute.xlu0 %519 }
 0x3fc   :  { %1578 = vmatprep.subr.bf16.mxu0 %v1577_v54  ;;  %605 = vst.msk [vmem:[#allocation2 + $0x10] sm:$0xff] %vm599_vm10, %v603_v55 }
 0x3fd   :  { %522 = vst.msk [vmem:[#allocation2 + $0x38] sm:$0xff] %vm492_vm8, %v520_v56  ;;  %1580 = vmatpush3.bf16.msra.mxu0 %v1577_v54 }
 0x3ff   :  { %v607_v57 = vpop.permute.xlu1 %606  ;;  %v623_v58 = vpop.permute.xlu0 %622 }
 0x400   :  { %609 = vst.msk [vmem:[#allocation2 + $0x18] sm:$0xff] %vm599_vm10, %v607_v57  ;;  %625 = vst.msk [vmem:[#allocation2 + $0x38] sm:$0xff] %vm599_vm10, %v623_v58  ;;  %v638_v3 = vld [vmem:[#allocation2 + $0x28] sm:$0xff] }
 0x403   :  { %v508_v59 = vpop.permute.xlu1 %507  ;;  %v635_v61 = vld [vmem:[#allocation2 + $0x10] sm:$0xff] }
 0x404   :  { %510 = vst.msk [vmem:[#allocation2 + $0x20] sm:$0xff] %vm492_vm8, %v508_v59 }
 0x407   :  { %v611_v60 = vpop.permute.xlu1 %610  ;;  %v636_v62 = vld [vmem:[#allocation2 + $0x18] sm:$0xff] }
 0x408   :  { %613 = vst.msk [vmem:[#allocation2 + $0x20] sm:$0xff] %vm599_vm10, %v611_v60  ;;  %v1581_v63 = vpack.c.bf16 %v636_v62, %v635_v61  ;;  %v640_v7 = vld [vmem:[#allocation2 + $0x38] sm:$0xff] }
 0x40a   :  { %1582 = vmatprep.subr.bf16.mxu0 %v1581_v63 }
 0x40b   :  { %v516_v0 = vpop.permute.xlu1 %515  ;;  %1584 = vmatpush3.bf16.msra.mxu0 %v1581_v63 }
 0x40c   :  { %518 = vst.msk [vmem:[#allocation2 + $0x30] sm:$0xff] %vm492_vm8, %v516_v0  ;;  %v1718_v0 = vmov 0.0|0.0  }
 0x40d   :  { %1601 = vmatprep.subr.bf16.mxu1 %v1718_v0 }
 0x40f   :  { %v619_v1 = vpop.permute.xlu1 %618  ;;  %v637_v2 = vld [vmem:[#allocation2 + $0x20] sm:$0xff] }
 0x410   :  { %621 = vst.msk [vmem:[#allocation2 + $0x30] sm:$0xff] %vm599_vm10, %v619_v1  ;;  %v1585_v4 = vpack.c.bf16 %v638_v3, %v637_v2 }
 0x412   :  { %1586 = vmatprep.subr.bf16.mxu0 %v1585_v4 }
 0x413   :  { %v628_v5 = vpop.permute.xlu1 %627  ;;  %1588 = vmatpush3.bf16.msra.mxu0 %v1585_v4 }
 0x414   :  { %630 = vst.msk [vmem:[#allocation2 + $0x40] sm:$0xff] %vm599_vm10, %v628_v5 }
 0x417   :  { %v639_v6 = vld [vmem:[#allocation2 + $0x30] sm:$0xff] }
 0x418   :  { %v1589_v8 = vpack.c.bf16 %v640_v7, %v639_v6 }
 0x41a   :  { %1590 = vmatprep.subr.bf16.mxu0 %v1589_v8 }
 0x41b   :  { %1592 = vmatpush3.bf16.msra.mxu0 %v1589_v8  ;;  %v641_v9 = vld [vmem:[#allocation2 + $0x40] sm:$0xff] }
 0x41c   :  { %1418 = vmatprep.subr.mxu0 %v641_v9 }
 0x41f   :  { %1419 = vmatpush3.msra.mxu0 %v641_v9 }
 0x420   :  { %1421 = vmatmul.mubr.msk.f32.vlgmr.msra.gmra.mrb[6].mxu0 %vm642_vm9, %v632_v11  ;;  %1594 = vmatprep.subr.msk.bf16.mxu0 %vm2053_vm14, %v1699_v48 }
 0x421   :  { %1596 = vmatpush3.bf16.msk.msra.mxu0 %vm2053_vm14, %v1699_v48 }
 0x422   :  { %1598 = vmatprep.subr.msk.bf16.mxu0 %vm2053_vm14, %v1699_v48 }
 0x4f3   :  { %v1422_v12 = vpop.f32.mrb[6].mxu0 }
 0x4f4   :  { %v715_v13 = vpop.f32.mrb[7].mxu0  ;;  %v728_v14 = vsel %vm724_vm11, %v1422_v12, 0.0 }
 0x4f5   :  { %729 = vadd.xlane.f32.xlu1 %v728_v14  ;;  %v725_v15 = vsel %vm724_vm11, %v715_v13, 0.0  ;;  %v2135_v14 = vld [vmem:[%s2191_s3] sm:$0x3]  ;;  %s1722_s3 = smov [#allocation4]  }
 0x4f6   :  { %726 = vadd.xlane.f32.xlu0 %v725_v15  ;;  %v1119_v15 = vrot.slane %v2135_v14, %v291_v41  ;;  %s1229_s1 = sshll.u32 %s1722_s3, 4  ;;  %s1230_s1 = int_to_ptr.vmem [resolvable:$true] %s1229_s1 }
 0x4f7   :  { %s1672_s5 = scalar_lea.vmem %s1230_s1, 16  ;;  %s1676_s19 = scalar_lea.vmem %s1230_s1, 32 }
 0x4f8   :  { %1382 = vmatprep.mubr.msk.f32.mxu1 %vm492_vm8, %v1119_v15  ;;  %p1673_p0 = scmp.ne.s32.totalorder %s1230_s1, %s1672_s5  ;;  %p1677_p1 = scmp.lt.s32.totalorder %s1230_s1, %s1230_s1 }
 0x4f9   :  { %p1678_p2 = scmp.lt.s32.totalorder %s1676_s19, %s1672_s5 }
 0x4fb   :  { %p1679_p3 = por %p1678_p2, %p1677_p1 }
 0x4fd   :  { %p1680_p4 = pnand %p1679_p3, %p1673_p0 }
 0x506   :  { %765 = vperm.xlu1 %1658, %v1979_v10  }
 0x50a   :  { %1659 = vset.pattern.permute.xlu1 %v1709_v31 }
 0x582   :  { %v730_v16 = vpop.xlane.xlu1 %729 }
 0x583   :  { %v733_v17 = vmul.f32 0.03125, %v730_v16  ;;  %v727_v18 = vpop.xlane.xlu0 %726 }
 0x584   :  { %v732_v19 = vmul.f32 0.03125, %v727_v18 }
 0x585   :  { %v735_v20 = vsub.f32 %v1422_v12, %v733_v17 }
 0x586   :  { %v734_v21 = vsub.f32 %v715_v13, %v732_v19  ;;  %v766_v45 = vpop.permute.xlu1 %765 }
 0x587   :  { %v737_v28 = vmul.f32 %v735_v20, %v735_v20 }
 0x588   :  { %v736_v22 = vmul.f32 %v734_v21, %v734_v21 }
 0x589   :  { %v741_v29 = vsel %vm724_vm11, %v737_v28, 0.0 }
 0x58a   :  { %v738_v23 = vsel %vm724_vm11, %v736_v22, 0.0 }
 0x58b   :  { %739 = vadd.xlane.f32.xlu0 %v738_v23 }
 0x58f   :  { %742 = vadd.xlane.f32.xlu0 %v741_v29 }
 0x618   :  { %v740_v32 = vpop.xlane.xlu0 %739 }
 0x619   :  { %v744_v33 = vmul.f32 0.03125, %v740_v32 }
 0x61b   :  { %v746_v34 = vadd.f32 1e-05, %v744_v33 }
 0x61c   :  { %v743_v35 = vpop.xlane.xlu0 %742 }
 0x61d   :  { %1666 = vrsqrt.f32 %v746_v34  ;;  %v745_v24 = vmul.f32 0.03125, %v743_v35 }
 0x61f   :  { %v747_v36 = vadd.f32 1e-05, %v745_v24 }
 0x621   :  { %1668 = vrsqrt.f32 %v747_v36 }
 0x627   :  { %v1667_v25 = vpop.eup %1666 }
 0x628   :  { %v750_v26 = vmul.f32 %v1667_v25, %v1979_v10 }
 0x62a   :  { %754 = vperm.xlu1 %1659, %v750_v26  }
 0x62b   :  { %v1669_v38 = vpop.eup %1668 }
 0x62c   :  { %v751_v42 = vmul.f32 %v1669_v38, %v28_v27 }
 0x62e   :  { %759 = vperm.xlu0 %1657, %v751_v42   ;;  %1660 = vset.pattern.permute.xlu1 %v1708_v30 }
 0x62f   :  { %770 = vperm.xlu1 %1660, %v28_v27  }
 0x633   :  { %1662 = vset.pattern.permute.xlu1 %v1721_v37 }
 0x6a9   :  { %v755_v46 = vpop.permute.xlu1 %754 }
 0x6aa   :  { %v762_v47 = vmul.f32 %v755_v46, %v734_v21 }
 0x6ac   :  { %v773_v39 = vadd.f32 %v766_v45, %v762_v47 }
 0x6ad   :  { %v760_v49 = vpop.permute.xlu0 %759 }
 0x6ae   :  { %v763_v50 = vmul.f32 %v760_v49, %v735_v20  ;;  %v771_v51 = vpop.permute.xlu1 %770  ;;  %vm775_vm15 = vcmp.ge.f32.partialorder %v773_v39, 0.0  ;;  %v777_v52 = vmul.f32 0.2, %v773_v39 }
 0x6b0   :  { %v774_v53 = vadd.f32 %v771_v51, %v763_v50  ;;  %v779_v54 = vsel %vm775_vm15, %v773_v39, %v777_v52 }
 0x6b1   :  { %940 = vrot.lane.b32.xlu1 %v779_v54, %s1702_s21  ;;  %1427 = vmatprep.mubr.msk.f32.mxu0 %vm492_vm8, %v779_v54 }
 0x6b2   :  { %v778_v55 = vmul.f32 0.2, %v774_v53  ;;  %vm776_vm0 = vcmp.ge.f32.partialorder %v774_v53, 0.0 }
 0x6b4   :  { %v780_v56 = vsel %vm776_vm0, %v774_v53, %v778_v55 }
 0x6b5   :  { %942 = vrot.lane.b32.xlu1 %v780_v56, %s1702_s21  ;;  %1428 = vmatmul.mubr.msk.f32.vlgmr.msra.gmra.mrb[8].mxu0 %vm492_vm8, %v780_v56 }
 0x6b6   :  { %1600 = vmatpush3.bf16.msk.msra.mxu0 %vm2053_vm14, %v1699_v48 }
 0x723   :  { %v941_v57 = vpop.permute.xlu1 %940 }
 0x724   :  { %1434 = vmatprep.mubr.msk.f32.mxu0 %vm492_vm8, %v941_v57 }
 0x727   :  { %v943_v58 = vpop.permute.xlu1 %942 }
 0x728   :  { %1435 = vmatmul.mubr.msk.f32.vlgmr.msra.gmra.mrb[10].mxu0 %vm492_vm8, %v943_v58 }
 0x788   :  { %v2075_v59 = vpop.f32.mrb[8].mxu0 }
 0x789   :  { %878 = vrot.lane.b32.xlu0 %v2075_v59, %s1710_s4  ;;  %v862_v60 = vpop.f32.mrb[9].mxu0  ;;  %873 = vst.msk [vmem:[#allocation3 + $0x8] sm:$0xff] %vm871_vm1, %v2075_v59 }
 0x78a   :  { %876 = vrot.lane.b32.xlu1 %v862_v60, %s1710_s4  ;;  %872 = vst.msk [vmem:[#allocation3] sm:$0xff] %vm871_vm1, %v862_v60 }
 0x78d   :  { %886 = vrot.lane.b32.xlu0 %v2075_v59, %s1711_s6 }
 0x78e   :  { %884 = vrot.lane.b32.xlu1 %v862_v60, %s1711_s6 }
 0x791   :  { %894 = vrot.lane.b32.xlu0 %v2075_v59, %s1712_s11 }
 0x792   :  { %892 = vrot.lane.b32.xlu1 %v862_v60, %s1712_s11 }
 0x795   :  { %902 = vrot.lane.b32.xlu0 %v2075_v59, %s1713_s12 }
 0x796   :  { %900 = vrot.lane.b32.xlu1 %v862_v60, %s1713_s12 }
 0x799   :  { %910 = vrot.lane.b32.xlu0 %v2075_v59, %s1714_s13 }
 0x79a   :  { %908 = vrot.lane.b32.xlu1 %v862_v60, %s1714_s13 }
 0x79d   :  { %918 = vrot.lane.b32.xlu0 %v2075_v59, %s1715_s14 }
 0x79e   :  { %916 = vrot.lane.b32.xlu1 %v862_v60, %s1715_s14 }
 0x7a1   :  { %926 = vrot.lane.b32.xlu0 %v2075_v59, %s1716_s15 }
 0x7a2   :  { %924 = vrot.lane.b32.xlu1 %v862_v60, %s1716_s15 }
 0x7fb   :  { %v879_v48 = vpop.permute.xlu0 %878  ;;  %v1436_v61 = vpop.f32.mrb[10].mxu0 }
 0x7fc   :  { %883 = vst.msk [vmem:[#allocation3 + $0x18] sm:$0xff] %vm871_vm1, %v879_v48  ;;  %v877_v62 = vpop.permute.xlu1 %876  ;;  %1038 = vrot.lane.b32.xlu0 %v1436_v61, %s1710_s4  ;;  %1027 = vrot.lane.b32.xlu1 %v1436_v61, %s1717_s16  ;;  %v1014_v63 = vpop.f32.mrb[11].mxu0 }
 0x7fd   :  { %1035 = vst.msk [vmem:[#allocation3 + $0x18] sm:$0xff] %vm1031_vm2, %v1436_v61 }
 0x7fe   :  { %882 = vst.msk [vmem:[#allocation3 + $0x10] sm:$0xff] %vm871_vm1, %v877_v62 }
 0x7ff   :  { %1034 = vst.msk [vmem:[#allocation3 + $0x10] sm:$0xff] %vm1031_vm2, %v1014_v63  ;;  %v887_v1 = vpop.permute.xlu0 %886 }
 0x800   :  { %891 = vst.msk [vmem:[#allocation3 + $0x28] sm:$0xff] %vm871_vm1, %v887_v1  ;;  %v885_v2 = vpop.permute.xlu1 %884  ;;  %1046 = vrot.lane.b32.xlu0 %v1436_v61, %s1711_s6  ;;  %1025 = vrot.lane.b32.xlu1 %v1014_v63, %s1717_s16 }
 0x801   :  { %890 = vst.msk [vmem:[#allocation3 + $0x20] sm:$0xff] %vm871_vm1, %v885_v2 }
 0x803   :  { %v895_v3 = vpop.permute.xlu0 %894 }
 0x804   :  { %899 = vst.msk [vmem:[#allocation3 + $0x38] sm:$0xff] %vm871_vm1, %v895_v3  ;;  %v893_v4 = vpop.permute.xlu1 %892  ;;  %1054 = vrot.lane.b32.xlu0 %v1436_v61, %s1712_s11  ;;  %932 = vrot.lane.b32.xlu1 %v862_v60, %s1719_s17  ;;  %v1096_v31 = vld [vmem:[#allocation3 + $0x18] sm:$0xff] }
 0x805   :  { %898 = vst.msk [vmem:[#allocation3 + $0x30] sm:$0xff] %vm871_vm1, %v893_v4 }
 0x806   :  { %v1095_v30 = vld [vmem:[#allocation3 + $0x10] sm:$0xff] }
 0x807   :  { %v903_v5 = vpop.permute.xlu0 %902  ;;  %v1605_v34 = vpack.c.bf16 %v1096_v31, %v1095_v30 }
 0x808   :  { %907 = vst.msk [vmem:[#allocation3 + $0x48] sm:$0xff] %vm871_vm1, %v903_v5  ;;  %v901_v6 = vpop.permute.xlu1 %900  ;;  %1062 = vrot.lane.b32.xlu0 %v1436_v61, %s1713_s12  ;;  %1036 = vrot.lane.b32.xlu1 %v1014_v63, %s1710_s4 }
 0x809   :  { %906 = vst.msk [vmem:[#allocation3 + $0x40] sm:$0xff] %vm871_vm1, %v901_v6 }
 0x80b   :  { %v911_v7 = vpop.permute.xlu0 %910 }
 0x80c   :  { %915 = vst.msk [vmem:[#allocation3 + $0x58] sm:$0xff] %vm871_vm1, %v911_v7  ;;  %v909_v8 = vpop.permute.xlu1 %908  ;;  %1070 = vrot.lane.b32.xlu0 %v1436_v61, %s1714_s13  ;;  %1044 = vrot.lane.b32.xlu1 %v1014_v63, %s1711_s6 }
 0x80d   :  { %914 = vst.msk [vmem:[#allocation3 + $0x50] sm:$0xff] %vm871_vm1, %v909_v8  ;;  %v1720_v8 = vmov 4  }
 0x80e   :  { %1661 = vset.pattern.permute.xlu0 %v1720_v8 }
 0x80f   :  { %v919_v9 = vpop.permute.xlu0 %918 }
 0x810   :  { %923 = vst.msk [vmem:[#allocation3 + $0x68] sm:$0xff] %vm871_vm1, %v919_v9  ;;  %v917_v11 = vpop.permute.xlu1 %916  ;;  %1078 = vrot.lane.b32.xlu0 %v1436_v61, %s1715_s14  ;;  %1052 = vrot.lane.b32.xlu1 %v1014_v63, %s1712_s11 }
 0x811   :  { %922 = vst.msk [vmem:[#allocation3 + $0x60] sm:$0xff] %vm871_vm1, %v917_v11 }
 0x813   :  { %v927_v12 = vpop.permute.xlu0 %926 }
 0x814   :  { %931 = vst.msk [vmem:[#allocation3 + $0x78] sm:$0xff] %vm871_vm1, %v927_v12  ;;  %v925_v13 = vpop.permute.xlu1 %924  ;;  %934 = vrot.lane.b32.xlu0 %v2075_v59, %s1719_s17  ;;  %1060 = vrot.lane.b32.xlu1 %v1014_v63, %s1713_s12 }
 0x815   :  { %930 = vst.msk [vmem:[#allocation3 + $0x70] sm:$0xff] %vm871_vm1, %v925_v13 }
 0x818   :  { %1086 = vrot.lane.b32.xlu0 %v1436_v61, %s1716_s15  ;;  %1068 = vrot.lane.b32.xlu1 %v1014_v63, %s1714_s13 }
 0x81c   :  { %1076 = vrot.lane.b32.xlu1 %v1014_v63, %s1715_s14 }
 0x820   :  { %1084 = vrot.lane.b32.xlu1 %v1014_v63, %s1716_s15  ;;  %v1115_v63 = vrot.slane %v2135_v14, %v287_v40 }
 0x86e   :  { %v1039_v16 = vpop.permute.xlu0 %1038  ;;  %v1028_v17 = vpop.permute.xlu1 %1027 }
 0x86f   :  { %1043 = vst.msk [vmem:[#allocation3 + $0x28] sm:$0xff] %vm1031_vm2, %v1039_v16  ;;  %1033 = vst.msk [vmem:[#allocation3 + $0x8] sm:$0xff] %vm1031_vm2, %v1028_v17 }
 0x872   :  { %v1047_v18 = vpop.permute.xlu0 %1046  ;;  %v1026_v19 = vpop.permute.xlu1 %1025 }
 0x873   :  { %1051 = vst.msk [vmem:[#allocation3 + $0x38] sm:$0xff] %vm1031_vm2, %v1047_v18  ;;  %1032 = vst.msk [vmem:[#allocation3] sm:$0xff] %vm1031_vm2, %v1026_v19 }
 0x876   :  { %v1055_v20 = vpop.permute.xlu0 %1054  ;;  %v933_v21 = vpop.permute.xlu1 %932  ;;  %v1094_v28 = vld [vmem:[#allocation3 + $0x8] sm:$0xff] }
 0x877   :  { %1059 = vst.msk [vmem:[#allocation3 + $0x48] sm:$0xff] %vm1031_vm2, %v1055_v20  ;;  %v1098_v25 = vld [vmem:[#allocation3 + $0x28] sm:$0xff] }
 0x878   :  { %938 = vst.msk [vmem:[#allocation3 + $0x80] sm:$0xff] %vm871_vm1, %v933_v21 }
 0x87a   :  { %v1063_v41 = vpop.permute.xlu0 %1062  ;;  %v1037_v22 = vpop.permute.xlu1 %1036  ;;  %v1093_v23 = vld [vmem:[#allocation3] sm:$0xff]  ;;  %v1100_v43 = vld [vmem:[#allocation3 + $0x38] sm:$0xff] }
 0x87b   :  { %1067 = vst.msk [vmem:[#allocation3 + $0x58] sm:$0xff] %vm1031_vm2, %v1063_v41  ;;  %1042 = vst.msk [vmem:[#allocation3 + $0x20] sm:$0xff] %vm1031_vm2, %v1037_v22  ;;  %v1602_v29 = vpack.c.bf16 %v1094_v28, %v1093_v23 }
 0x87d   :  { %1603 = vmatpush1.bf16.msra.mxu1 %v1602_v29 }
 0x87e   :  { %v1071_v32 = vpop.permute.xlu0 %1070  ;;  %v1045_v33 = vpop.permute.xlu1 %1044  ;;  %1604 = vmatprep.subr.bf16.mxu1 %v1718_v0  ;;  %v1102_v39 = vld [vmem:[#allocation3 + $0x48] sm:$0xff] }
 0x87f   :  { %1075 = vst.msk [vmem:[#allocation3 + $0x68] sm:$0xff] %vm1031_vm2, %v1071_v32  ;;  %1050 = vst.msk [vmem:[#allocation3 + $0x30] sm:$0xff] %vm1031_vm2, %v1045_v33 }
 0x881   :  { %1606 = vmatpush1.bf16.msra.mxu1 %v1605_v34 }
 0x882   :  { %v1079_v35 = vpop.permute.xlu0 %1078  ;;  %v1053_v24 = vpop.permute.xlu1 %1052  ;;  %1607 = vmatprep.subr.bf16.mxu1 %v1718_v0  ;;  %v1097_v36 = vld [vmem:[#allocation3 + $0x20] sm:$0xff]  ;;  %v1104_v52 = vld [vmem:[#allocation3 + $0x58] sm:$0xff] }
 0x883   :  { %1083 = vst.msk [vmem:[#allocation3 + $0x78] sm:$0xff] %vm1031_vm2, %v1079_v35  ;;  %1058 = vst.msk [vmem:[#allocation3 + $0x40] sm:$0xff] %vm1031_vm2, %v1053_v24  ;;  %v1608_v26 = vpack.c.bf16 %v1098_v25, %v1097_v36 }
 0x885   :  { %1609 = vmatpush1.bf16.msra.mxu1 %v1608_v26 }
 0x886   :  { %v935_v27 = vpop.permute.xlu0 %934  ;;  %v1061_v38 = vpop.permute.xlu1 %1060  ;;  %1610 = vmatprep.subr.bf16.mxu1 %v1718_v0  ;;  %v1099_v42 = vld [vmem:[#allocation3 + $0x30] sm:$0xff]  ;;  %v1106_v56 = vld [vmem:[#allocation3 + $0x68] sm:$0xff] }
 0x887   :  { %939 = vst.msk [vmem:[#allocation3 + $0x88] sm:$0xff] %vm871_vm1, %v935_v27  ;;  %v1611_v44 = vpack.c.bf16 %v1100_v43, %v1099_v42 }
 0x888   :  { %1066 = vst.msk [vmem:[#allocation3 + $0x50] sm:$0xff] %vm1031_vm2, %v1061_v38 }
 0x889   :  { %1612 = vmatpush1.bf16.msra.mxu1 %v1611_v44 }
 0x88a   :  { %v1087_v45 = vpop.permute.xlu0 %1086  ;;  %v1069_v46 = vpop.permute.xlu1 %1068  ;;  %1613 = vmatprep.subr.bf16.mxu1 %v1718_v0  ;;  %v1101_v47 = vld [vmem:[#allocation3 + $0x40] sm:$0xff]  ;;  %v1108_v59 = vld [vmem:[#allocation3 + $0x78] sm:$0xff] }
 0x88b   :  { %1091 = vst.msk [vmem:[#allocation3 + $0x88] sm:$0xff] %vm1031_vm2, %v1087_v45  ;;  %1074 = vst.msk [vmem:[#allocation3 + $0x60] sm:$0xff] %vm1031_vm2, %v1069_v46  ;;  %v1614_v49 = vpack.c.bf16 %v1102_v39, %v1101_v47 }
 0x88d   :  { %1615 = vmatpush1.bf16.msra.mxu1 %v1614_v49 }
 0x88e   :  { %v1077_v50 = vpop.permute.xlu1 %1076  ;;  %1616 = vmatprep.subr.bf16.mxu1 %v1718_v0 }
 0x88f   :  { %v1103_v51 = vld [vmem:[#allocation3 + $0x50] sm:$0xff]  ;;  %1082 = vst.msk [vmem:[#allocation3 + $0x70] sm:$0xff] %vm1031_vm2, %v1077_v50 }
 0x890   :  { %v1617_v53 = vpack.c.bf16 %v1104_v52, %v1103_v51 }
 0x892   :  { %1618 = vmatpush1.bf16.msra.mxu1 %v1617_v53  ;;  %v1085_v54 = vpop.permute.xlu1 %1084  ;;  %v1105_v55 = vld [vmem:[#allocation3 + $0x60] sm:$0xff]  ;;  %v1110_v61 = vld [vmem:[#allocation3 + $0x88] sm:$0xff] }
 0x893   :  { %1619 = vmatprep.subr.bf16.mxu1 %v1718_v0  ;;  %1090 = vst.msk [vmem:[#allocation3 + $0x80] sm:$0xff] %vm1031_vm2, %v1085_v54  ;;  %v1620_v57 = vpack.c.bf16 %v1106_v56, %v1105_v55 }
 0x896   :  { %1621 = vmatpush1.bf16.msra.mxu1 %v1620_v57  ;;  %v1107_v58 = vld [vmem:[#allocation3 + $0x70] sm:$0xff] }
 0x897   :  { %1622 = vmatprep.subr.bf16.mxu1 %v1718_v0  ;;  %v1623_v60 = vpack.c.bf16 %v1108_v59, %v1107_v58 }
 0x89a   :  { %1624 = vmatpush1.bf16.msra.mxu1 %v1623_v60  ;;  %v1109_v48 = vld [vmem:[#allocation3 + $0x80] sm:$0xff] }
 0x89b   :  { %1625 = vmatprep.subr.bf16.mxu1 %v1718_v0  ;;  %v1626_v62 = vpack.c.bf16 %v1110_v61, %v1109_v48 }
 0x89e   :  { %1627 = vmatpush1.bf16.msra.mxu1 %v1626_v62 }
 0x8a1   :  { %1188 = vmatmul.mubr.f32.vlgmr.msra.gmra.mrb[2].mxu1 %v1115_v63 }
 0x974   :  { %v1189_v1 = vpop.f32.mrb[2].mxu1 }
 0x975   :  { %v1191_v2 = vpop.f32.mrb[3].mxu1  ;;  %v1194_v3 = vsel %vm1193_vm3, %v1189_v1, 0.0 }
 0x976   :  { %1195 = vadd.xlane.f32.xlu1 %v1194_v3 }
 0x987   :  { %1215 = vperm.xlu1 %1662, %v1979_v10  }
 0xa03   :  { %v1196_v4 = vpop.xlane.xlu1 %1195 }
 0xa04   :  { %v1198_v5 = vmul.f32 0.5, %v1196_v4 }
 0xa06   :  { %v1199_v6 = vsub.f32 %v1189_v1, %v1198_v5 }
 0xa07   :  { %v1216_v15 = vpop.permute.xlu1 %1215 }
 0xa08   :  { %v1200_v7 = vmul.f32 %v1199_v6, %v1199_v6 }
 0xa0a   :  { %v1201_v0 = vsel %vm1193_vm3, %v1200_v7, 0.0 }
 0xa0b   :  { %1202 = vadd.xlane.f32.xlu0 %v1201_v0 }
 0xa98   :  { %v1203_v40 = vpop.xlane.xlu0 %1202 }
 0xa99   :  { %v1204_v9 = vmul.f32 0.5, %v1203_v40 }
 0xa9b   :  { %v1205_v11 = vadd.f32 1e-05, %v1204_v9 }
 0xa9d   :  { %1670 = vrsqrt.f32 %v1205_v11 }
 0xaa7   :  { %v1671_v12 = vpop.eup %1670 }
 0xaa8   :  { %v1207_v13 = vmul.f32 %v1671_v12, %v1979_v10 }
 0xaaa   :  { %1210 = vperm.xlu0 %1661, %v1207_v13  }
 0xaae   :  { %1663 = vset.pattern.permute.xlu0 %v1721_v37 }
 0xb29   :  { %v1211_v14 = vpop.permute.xlu0 %1210 }
 0xb2a   :  { %v1213_v16 = vmul.f32 %v1211_v14, %v1199_v6 }
 0xb2c   :  { %v1218_v17 = vadd.f32 %v1216_v15, %v1213_v16 }
 0xb2e   :  { %v1220_v18 = vmul.f32 0.2, %v1218_v17  ;;  %vm1219_vm4 = vcmp.ge.f32.partialorder %v1218_v17, 0.0 }
 0xb30   :  { %v1221_v19 = vsel %vm1219_vm4, %v1218_v17, %v1220_v18 }
 0xb31   :  { %1222 = vst.msk [vmem:[#allocation4] sm:$0x1] %vm1193_vm3, %v1221_v19 }
 0xb32   :  { %1683 = shalt.err (!%p1680_p4)
}
 0xb33   :  { %s1684_s22 = scalar_lea.hbm %s2195_s7, 16 }
 0xb34   :  { %p1685_p5 = scmp.ne.s32.totalorder %s2195_s7, %s1684_s22  ;;  %p1688_p6 = scmp.lt.u32.totalorder %s1684_s22, %s2195_s7 }
 0xb36   :  { %p1690_p7 = pnand %p1688_p6, %p1685_p5 }
 0xb38   :  { %1693 = shalt.err (!%p1690_p7)
}
 0xb39   :  { %1232 = dma.vmem_to_hbm [thread:$0]  %s1230_s1, 16, %s2195_s7, [#allocation5]  }
 0xb3a   :  { %1694 = dma.done.wait [#allocation5], 16  }
 0xb3b   :  { %1695 = vsyncadd [#allocation5], 4294967280 }
 0xb3c   :  { %1236 = vsyncpa [#allocation5], 1 }

</bundles_post_ra>
